<compile_context>
chip_gen: v6e
topology: v6e:2x2x1
jax: 0.10.0
libtpu: 0.0.40
codegen_flags: <defaults>
</compile_context>

<pallas_src>
import jax
import jax.numpy as jnp
from jax import lax
from jax.experimental import pallas as pl
from jax.experimental.pallas import tpu as pltpu


# --------------------------- fused Seq2Seq forward ---------------------------
def seq2seq_forward(params, enc_tokens, dec_tokens, reverse_input=False):
    """enc_tokens: (S, B) int32, dec_tokens: (T, B) int32 -> (T, B, trg_vocab)."""
    if reverse_input:
        enc_tokens = enc_tokens[::-1]
    S, B = enc_tokens.shape
    T = dec_tokens.shape[0]
    H = params['enc_whh'].shape[0]
    E = params['enc_emb'].shape[1]
    V = params['w_out'].shape[1]
    f32 = jnp.float32

    def rup(n, m=128):
        return ((n + m - 1) // m) * m

    Vp = rup(V)            # lane-dense output padding (41 -> 128)
    Gp = rup(3 * H)        # gate width padding (96 -> 128)

    # ---- one-time (wrapper / XLA side) weight prep: fused tables, folded biases ----
    def prep_gru(emb, wih, whh, bih, bhh):
        vocab = emb.shape[0]
        vpad = rup(vocab)
        fused = jnp.pad(emb @ wih, ((0, vpad - vocab), (0, Gp - 3 * H)))     # (Vp, Gp)
        gi_bias = bih + jnp.concatenate(                                     # fold b_hr/b_hz
            [bhh[:, :2 * H], jnp.zeros((1, H), f32)], axis=1)
        gi_bias = jnp.pad(gi_bias, ((0, 0), (0, Gp - 3 * H)))                # (1, Gp)
        whh_p = jnp.pad(whh, ((0, 0), (0, Gp - 3 * H)))                      # (H, Gp)
        return fused, gi_bias, whh_p, bhh[:, 2 * H:]                         # b_hn (1, H)

    enc_tab, enc_bias, enc_whh_p, enc_bhhn = prep_gru(
        params['enc_emb'], params['enc_wih'], params['enc_whh'],
        params['enc_bih'], params['enc_bhh'])
    dec_tab, dec_bias, dec_whh_p, dec_bhhn = prep_gru(
        params['dec_emb'], params['dec_wih'], params['dec_whh'],
        params['dec_bih'], params['dec_bhh'])

    wpre_dec = params['w_pre'][:H]                                           # (H, E)
    wpre_ctx = params['w_pre'][H:]                                           # (H, E)
    b_pre = params['b_pre'].reshape(1, E)
    w_out_p = jnp.pad(params['w_out'], ((0, 0), (0, Vp - V)))                # (E, Vp)
    b_out_p = jnp.pad(params['b_out'].reshape(1, V), ((0, 0), (0, Vp - V)))  # (1, Vp)

    # Additive attention mask over the flattened (T*B) x (S*B) pair space:
    # row i = t*B + b, col j = s*B + b'; keep only b == b'.
    row_b = jnp.arange(T * B, dtype=jnp.int32) % B
    col_b = jnp.arange(S * B, dtype=jnp.int32) % B
    attn_bias = jnp.where(row_b[:, None] == col_b[None, :], 0.0, -1e30).astype(f32)

    # ------------------------------- the kernel -------------------------------
    def gru_steps(tok, tab, gi_bias, whh_p, bhh_n, h0, n_steps, state_scr):
        """GRU over n_steps; input projection (incl. embedding) hoisted out of the loop.
        tok: (n_steps*B, 1) int32, row index = t*B + b. Writes h_t to state_scr[t*B:(t+1)*B]."""
        n_rows = n_steps * B
        vpad = tab.shape[0]
        iota = lax.broadcasted_iota(jnp.int32, (n_rows, vpad), 1)
        onehot = (tok == iota).astype(f32)                                    # (N, Vp) lane-dense
        gi = jnp.dot(onehot, tab, preferred_element_type=f32) + gi_bias      # (N, Gp) hoisted
        gi_rz = gi[:, :2 * H]
        gi_n = gi[:, 2 * H:3 * H]
        h = h0
        for t in range(n_steps):
            lo, hi = t * B, (t + 1) * B
            gh = jnp.dot(h, whh_p, preferred_element_type=f32)               # ONE MXU op / step
            rz = jax.nn.sigmoid(gi_rz[lo:hi] + gh[:, :2 * H])                # ONE sigmoid for r,z
            r, z = rz[:, :H], rz[:, H:]
            n = jnp.tanh(gi_n[lo:hi] + r * (gh[:, 2 * H:3 * H] + bhh_n))
            h = (1.0 - z) * n + z * h
            state_scr[lo:hi, :] = h                                          # contiguous row store
        return h

    def kernel(enc_tok_ref, dec_tok_ref,
               enc_tab_ref, enc_bias_ref, enc_whh_ref, enc_bhhn_ref,
               dec_tab_ref, dec_bias_ref, dec_whh_ref, dec_bhhn_ref,
               attn_bias_ref, wpre_dec_ref, wpre_ctx_ref, bpre_ref,
               wout_ref, bout_ref,
               out_ref, enc_scr, dec_scr):
        # ---------------- encoder GRU ----------------
        h0 = jnp.zeros((B, H), f32)
        h_enc = gru_steps(enc_tok_ref[...], enc_tab_ref[...], enc_bias_ref[...],
                          enc_whh_ref[...], enc_bhhn_ref[...], h0, S, enc_scr)
        # ---------------- decoder GRU (teacher forcing, init from encoder state) ----
        gru_steps(dec_tok_ref[...], dec_tab_ref[...], dec_bias_ref[...],
                  dec_whh_ref[...], dec_bhhn_ref[...], h_enc, T, dec_scr)

        # ------------ dot attention (flattened, batch-masked) + preoutput + output ------------
        dec = dec_scr[...]                                                   # (T*B, H)
        enc = enc_scr[...]                                                   # (S*B, H)
        scores = jnp.einsum('ih,jh->ij', dec, enc,
                            preferred_element_type=f32) + attn_bias_ref[...]  # (T*B, S*B)
        m = jnp.max(scores, axis=-1, keepdims=True)
        e = jnp.exp(scores - m)
        w = e / jnp.sum(e, axis=-1, keepdims=True)        # exact softmax (epilogue, not hot)
        ctx = jnp.dot(w, enc, preferred_element_type=f32)                    # (T*B, H)

        pre = (jnp.dot(dec, wpre_dec_ref[...], preferred_element_type=f32)
               + jnp.dot(ctx, wpre_ctx_ref[...], preferred_element_type=f32)
               + bpre_ref[...])
        act = jnp.tanh(pre)                               # dropout(p=0) == identity
        out_ref[...] = (jnp.dot(act, wout_ref[...], preferred_element_type=f32)
                        + bout_ref[...])                  # single lane-dense (T*B, Vp) store

    vmem = pl.BlockSpec(memory_space=pltpu.MemorySpace.VMEM)
    out_flat = pl.pallas_call(
        kernel,
        out_shape=jax.ShapeDtypeStruct((T * B, Vp), f32),
        in_specs=[vmem] * 16,
        out_specs=vmem,
        scratch_shapes=[pltpu.VMEM((S * B, H), f32),      # encoder states, time-major flat
                        pltpu.VMEM((T * B, H), f32)],     # decoder states, time-major flat
    )(enc_tokens.reshape(S * B, 1), dec_tokens.reshape(T * B, 1),
      enc_tab, enc_bias, enc_whh_p, enc_bhhn,
      dec_tab, dec_bias, dec_whh_p, dec_bhhn,
      attn_bias, wpre_dec, wpre_ctx, b_pre, w_out_p, b_out_p)

    # free reshape + drop vocab padding
    return out_flat.reshape(T, B, Vp)[:, :, :V]


# --------------------------------- params ---------------------------------
def init_params(key, src_vocab, trg_vocab, emb, hid):
    ks = jax.random.split(key, 12)

    def u(k, shape, scale):
        return jax.random.uniform(k, shape, jnp.float32, -scale, scale)

    s = float(hid) ** -0.5
    return dict(
        enc_emb=u(ks[0], (src_vocab, emb), 0.1),
        dec_emb=u(ks[1], (trg_vocab, emb), 0.1),
        enc_wih=u(ks[2], (emb, 3 * hid), s),
        enc_whh=u(ks[3], (hid, 3 * hid), s),
        enc_bih=u(ks[4], (1, 3 * hid), s),
        enc_bhh=u(ks[5], (1, 3 * hid), s),
        dec_wih=u(ks[6], (emb, 3 * hid), s),
        dec_whh=u(ks[7], (hid, 3 * hid), s),
        dec_bih=u(ks[8], (1, 3 * hid), s),
        dec_bhh=u(ks[9], (1, 3 * hid), s),
        w_pre=u(ks[10], (2 * hid, emb), float(2 * hid) ** -0.5),
        b_pre=jnp.zeros((emb,), jnp.float32),
        w_out=u(ks[11], (emb, trg_vocab), float(emb) ** -0.5),
        b_out=jnp.zeros((trg_vocab,), jnp.float32),
    )


# --------------------------- pure-JAX reference ---------------------------
def _gru_ref(x_emb, h0, wih, whh, bih, bhh):
    H = h0.shape[-1]

    def step(h, x):
        gi = x @ wih + bih[0]
        gh = h @ whh + bhh[0]
        r = jax.nn.sigmoid(gi[:, :H] + gh[:, :H])
        z = jax.nn.sigmoid(gi[:, H:2 * H] + gh[:, H:2 * H])
        n = jnp.tanh(gi[:, 2 * H:] + r * gh[:, 2 * H:])
        h_new = (1.0 - z) * n + z * h
        return h_new, h_new

    hT, outs = lax.scan(step, h0, x_emb)
    return outs, hT


def seq2seq_ref(params, enc_tokens, dec_tokens):
    B = enc_tokens.shape[1]
    H = params['enc_whh'].shape[0]
    enc_emb = params['enc_emb'][enc_tokens]
    dec_emb = params['dec_emb'][dec_tokens]
    h0 = jnp.zeros((B, H), jnp.float32)
    enc_out, h_enc = _gru_ref(enc_emb, h0, params['enc_wih'], params['enc_whh'],
                              params['enc_bih'], params['enc_bhh'])
    dec_out, _ = _gru_ref(dec_emb, h_enc, params['dec_wih'], params['dec_whh'],
                          params['dec_bih'], params['dec_bhh'])
    scores = jnp.einsum('tbh,sbh->tbs', dec_out, enc_out)
    w = jax.nn.softmax(scores, axis=-1)
    ctx = jnp.einsum('tbs,sbh->tbh', w, enc_out)
    cat = jnp.concatenate([dec_out, ctx], axis=-1)
    pre = jnp.tanh(cat @ params['w_pre'] + params['b_pre'])
    return pre @ params['w_out'] + params['b_out']


if __name__ == "__main__":
    SRC_VOCAB, TRG_VOCAB = 37, 41
    EMB, HID = 32, 32
    S, T, B = 10, 8, 2

    key = jax.random.PRNGKey(0)
    kp, ke, kd = jax.random.split(key, 3)
    params = init_params(kp, SRC_VOCAB, TRG_VOCAB, EMB, HID)
    enc_tokens = jax.random.randint(ke, (S, B), 0, SRC_VOCAB, dtype=jnp.int32)
    dec_tokens = jax.random.randint(kd, (T, B), 0, TRG_VOCAB, dtype=jnp.int32)

    fwd = jax.jit(seq2seq_forward)
    logits = jax.block_until_ready(fwd(params, enc_tokens, dec_tokens))
    ref = jax.block_until_ready(seq2seq_ref(params, enc_tokens, dec_tokens))

    assert logits.shape == (T, B, TRG_VOCAB), logits.shape
    assert jnp.allclose(logits, ref, atol=2e-2, rtol=2e-2), \
        float(jnp.max(jnp.abs(logits - ref)))
    print("KERNEL_OK")
</pallas_src>

<mosaic_0001>
module attributes {stable_mosaic.version = 11 : i64} {
  func.func @kernel(%arg0: memref<20x1xi32, #tpu.memory_space<vmem>>, %arg1: memref<16x1xi32, #tpu.memory_space<vmem>>, %arg2: memref<128x128xf32, #tpu.memory_space<vmem>>, %arg3: memref<1x128xf32, #tpu.memory_space<vmem>>, %arg4: memref<32x128xf32, #tpu.memory_space<vmem>>, %arg5: memref<1x32xf32, #tpu.memory_space<vmem>>, %arg6: memref<128x128xf32, #tpu.memory_space<vmem>>, %arg7: memref<1x128xf32, #tpu.memory_space<vmem>>, %arg8: memref<32x128xf32, #tpu.memory_space<vmem>>, %arg9: memref<1x32xf32, #tpu.memory_space<vmem>>, %arg10: memref<16x20xf32, #tpu.memory_space<vmem>>, %arg11: memref<32x32xf32, #tpu.memory_space<vmem>>, %arg12: memref<32x32xf32, #tpu.memory_space<vmem>>, %arg13: memref<1x32xf32, #tpu.memory_space<vmem>>, %arg14: memref<32x128xf32, #tpu.memory_space<vmem>>, %arg15: memref<1x128xf32, #tpu.memory_space<vmem>>, %arg16: memref<16x128xf32, #tpu.memory_space<vmem>>, %arg17: memref<20x32xf32, #tpu.memory_space<vmem>>, %arg18: memref<16x32xf32, #tpu.memory_space<vmem>>) attributes {dimension_semantics = [], scalar_prefetch = 0 : i64, scratch_operands = 2 : i64, tpu.core_type = #tpu.core_type<tc>} {
    %cst = arith.constant 0.000000e+00 : f32
    %0 = vector.broadcast %cst : f32 to vector<2x32xf32>
    %c0 = arith.constant 0 : index
    %c0_0 = arith.constant 0 : index
    %1 = vector.load %arg0[%c0, %c0_0] : memref<20x1xi32, #tpu.memory_space<vmem>>, vector<20x1xi32>
    %c0_1 = arith.constant 0 : index
    %c0_2 = arith.constant 0 : index
    %2 = vector.load %arg2[%c0_1, %c0_2] : memref<128x128xf32, #tpu.memory_space<vmem>>, vector<128x128xf32>
    %c0_3 = arith.constant 0 : index
    %c0_4 = arith.constant 0 : index
    %3 = vector.load %arg3[%c0_3, %c0_4] : memref<1x128xf32, #tpu.memory_space<vmem>>, vector<1x128xf32>
    %c0_5 = arith.constant 0 : index
    %c0_6 = arith.constant 0 : index
    %4 = vector.load %arg4[%c0_5, %c0_6] : memref<32x128xf32, #tpu.memory_space<vmem>>, vector<32x128xf32>
    %c0_7 = arith.constant 0 : index
    %c0_8 = arith.constant 0 : index
    %5 = vector.load %arg5[%c0_7, %c0_8] : memref<1x32xf32, #tpu.memory_space<vmem>>, vector<1x32xf32>
    %6 = tpu.iota {dimensions = array<i32: 1>} : vector<20x128xi32>
    %7 = vector.broadcast %1 : vector<20x1xi32> to vector<20x128xi32>
    %8 = arith.cmpi eq, %7, %6 : vector<20x128xi32>
    %9 = arith.extui %8 : vector<20x128xi1> to vector<20x128xi32>
    %10 = arith.sitofp %9 : vector<20x128xi32> to vector<20x128xf32>
    %cst_9 = arith.constant dense<0.000000e+00> : vector<20x128xf32>
    %11 = tpu.matmul %10, %2, %cst_9 {dimension_numbers = #tpu.dot_dimension_numbers<[1], [0], [0], [1], [0, 0, 1, 1], [], []>} : vector<20x128xf32>, vector<128x128xf32>, vector<20x128xf32> -> vector<20x128xf32>
    %12 = vector.broadcast %3 : vector<1x128xf32> to vector<20x128xf32>
    %13 = arith.addf %11, %12 : vector<20x128xf32>
    %14 = vector.extract_strided_slice %13 {offsets = [0, 0], sizes = [20, 64], strides = [1, 1]} : vector<20x128xf32> to vector<20x64xf32>
    %15 = vector.extract_strided_slice %13 {offsets = [0, 64], sizes = [20, 32], strides = [1, 1]} : vector<20x128xf32> to vector<20x32xf32>
    %cst_10 = arith.constant dense<0.000000e+00> : vector<2x128xf32>
    %16 = tpu.matmul %0, %4, %cst_10 {dimension_numbers = #tpu.dot_dimension_numbers<[1], [0], [0], [1], [0, 0, 1, 1], [], []>} : vector<2x32xf32>, vector<32x128xf32>, vector<2x128xf32> -> vector<2x128xf32>
    %17 = vector.extract_strided_slice %14 {offsets = [0, 0], sizes = [2, 64], strides = [1, 1]} : vector<20x64xf32> to vector<2x64xf32>
    %18 = vector.extract_strided_slice %16 {offsets = [0, 0], sizes = [2, 64], strides = [1, 1]} : vector<2x128xf32> to vector<2x64xf32>
    %19 = arith.addf %17, %18 : vector<2x64xf32>
    %20 = arith.negf %19 : vector<2x64xf32>
    %21 = math.exp %20 : vector<2x64xf32>
    %cst_11 = arith.constant 1.000000e+00 : f32
    %22 = vector.broadcast %cst_11 : f32 to vector<2x64xf32>
    %23 = arith.addf %22, %21 : vector<2x64xf32>
    %24 = arith.divf %22, %23 : vector<2x64xf32>
    %25 = vector.extract_strided_slice %24 {offsets = [0, 0], sizes = [2, 32], strides = [1, 1]} : vector<2x64xf32> to vector<2x32xf32>
    %26 = vector.extract_strided_slice %24 {offsets = [0, 32], sizes = [2, 32], strides = [1, 1]} : vector<2x64xf32> to vector<2x32xf32>
    %27 = vector.extract_strided_slice %15 {offsets = [0, 0], sizes = [2, 32], strides = [1, 1]} : vector<20x32xf32> to vector<2x32xf32>
    %28 = vector.extract_strided_slice %16 {offsets = [0, 64], sizes = [2, 32], strides = [1, 1]} : vector<2x128xf32> to vector<2x32xf32>
    %29 = vector.broadcast %5 : vector<1x32xf32> to vector<2x32xf32>
    %30 = arith.addf %28, %29 : vector<2x32xf32>
    %31 = arith.mulf %25, %30 : vector<2x32xf32>
    %32 = arith.addf %27, %31 : vector<2x32xf32>
    %33 = math.tanh %32 : vector<2x32xf32>
    %cst_12 = arith.constant 1.000000e+00 : f32
    %34 = vector.broadcast %cst_12 : f32 to vector<2x32xf32>
    %35 = arith.subf %34, %26 : vector<2x32xf32>
    %36 = arith.mulf %35, %33 : vector<2x32xf32>
    %37 = arith.mulf %26, %0 : vector<2x32xf32>
    %38 = arith.addf %36, %37 : vector<2x32xf32>
    %c0_13 = arith.constant 0 : index
    %c0_14 = arith.constant 0 : index
    %39 = vector.load %arg17[%c0_13, %c0_14] : memref<20x32xf32, #tpu.memory_space<vmem>>, vector<2x32xf32>
    tpu.vector_store %arg17[%c0_13, %c0_14], %38 {strides = array<i32>} : memref<20x32xf32, #tpu.memory_space<vmem>>, vector<2x32xf32>,
    %cst_15 = arith.constant dense<0.000000e+00> : vector<2x128xf32>
    %40 = tpu.matmul %38, %4, %cst_15 {dimension_numbers = #tpu.dot_dimension_numbers<[1], [0], [0], [1], [0, 0, 1, 1], [], []>} : vector<2x32xf32>, vector<32x128xf32>, vector<2x128xf32> -> vector<2x128xf32>
    %41 = vector.extract_strided_slice %14 {offsets = [2, 0], sizes = [2, 64], strides = [1, 1]} : vector<20x64xf32> to vector<2x64xf32>
    %42 = vector.extract_strided_slice %40 {offsets = [0, 0], sizes = [2, 64], strides = [1, 1]} : vector<2x128xf32> to vector<2x64xf32>
    %43 = arith.addf %41, %42 : vector<2x64xf32>
    %44 = arith.negf %43 : vector<2x64xf32>
    %45 = math.exp %44 : vector<2x64xf32>
    %cst_16 = arith.constant 1.000000e+00 : f32
    %46 = vector.broadcast %cst_16 : f32 to vector<2x64xf32>
    %47 = arith.addf %46, %45 : vector<2x64xf32>
    %48 = arith.divf %46, %47 : vector<2x64xf32>
    %49 = vector.extract_strided_slice %48 {offsets = [0, 0], sizes = [2, 32], strides = [1, 1]} : vector<2x64xf32> to vector<2x32xf32>
    %50 = vector.extract_strided_slice %48 {offsets = [0, 32], sizes = [2, 32], strides = [1, 1]} : vector<2x64xf32> to vector<2x32xf32>
    %51 = vector.extract_strided_slice %15 {offsets = [2, 0], sizes = [2, 32], strides = [1, 1]} : vector<20x32xf32> to vector<2x32xf32>
    %52 = vector.extract_strided_slice %40 {offsets = [0, 64], sizes = [2, 32], strides = [1, 1]} : vector<2x128xf32> to vector<2x32xf32>
    %53 = vector.broadcast %5 : vector<1x32xf32> to vector<2x32xf32>
    %54 = arith.addf %52, %53 : vector<2x32xf32>
    %55 = arith.mulf %49, %54 : vector<2x32xf32>
    %56 = arith.addf %51, %55 : vector<2x32xf32>
    %57 = math.tanh %56 : vector<2x32xf32>
    %cst_17 = arith.constant 1.000000e+00 : f32
    %58 = vector.broadcast %cst_17 : f32 to vector<2x32xf32>
    %59 = arith.subf %58, %50 : vector<2x32xf32>
    %60 = arith.mulf %59, %57 : vector<2x32xf32>
    %61 = arith.mulf %50, %38 : vector<2x32xf32>
    %62 = arith.addf %60, %61 : vector<2x32xf32>
    %c2 = arith.constant 2 : index
    %c0_18 = arith.constant 0 : index
    %63 = vector.load %arg17[%c2, %c0_18] : memref<20x32xf32, #tpu.memory_space<vmem>>, vector<2x32xf32>
    tpu.vector_store %arg17[%c2, %c0_18], %62 {strides = array<i32>} : memref<20x32xf32, #tpu.memory_space<vmem>>, vector<2x32xf32>,
    %cst_19 = arith.constant dense<0.000000e+00> : vector<2x128xf32>
    %64 = tpu.matmul %62, %4, %cst_19 {dimension_numbers = #tpu.dot_dimension_numbers<[1], [0], [0], [1], [0, 0, 1, 1], [], []>} : vector<2x32xf32>, vector<32x128xf32>, vector<2x128xf32> -> vector<2x128xf32>
    %65 = vector.extract_strided_slice %14 {offsets = [4, 0], sizes = [2, 64], strides = [1, 1]} : vector<20x64xf32> to vector<2x64xf32>
    %66 = vector.extract_strided_slice %64 {offsets = [0, 0], sizes = [2, 64], strides = [1, 1]} : vector<2x128xf32> to vector<2x64xf32>
    %67 = arith.addf %65, %66 : vector<2x64xf32>
    %68 = arith.negf %67 : vector<2x64xf32>
    %69 = math.exp %68 : vector<2x64xf32>
    %cst_20 = arith.constant 1.000000e+00 : f32
    %70 = vector.broadcast %cst_20 : f32 to vector<2x64xf32>
    %71 = arith.addf %70, %69 : vector<2x64xf32>
    %72 = arith.divf %70, %71 : vector<2x64xf32>
    %73 = vector.extract_strided_slice %72 {offsets = [0, 0], sizes = [2, 32], strides = [1, 1]} : vector<2x64xf32> to vector<2x32xf32>
    %74 = vector.extract_strided_slice %72 {offsets = [0, 32], sizes = [2, 32], strides = [1, 1]} : vector<2x64xf32> to vector<2x32xf32>
    %75 = vector.extract_strided_slice %15 {offsets = [4, 0], sizes = [2, 32], strides = [1, 1]} : vector<20x32xf32> to vector<2x32xf32>
    %76 = vector.extract_strided_slice %64 {offsets = [0, 64], sizes = [2, 32], strides = [1, 1]} : vector<2x128xf32> to vector<2x32xf32>
    %77 = vector.broadcast %5 : vector<1x32xf32> to vector<2x32xf32>
    %78 = arith.addf %76, %77 : vector<2x32xf32>
    %79 = arith.mulf %73, %78 : vector<2x32xf32>
    %80 = arith.addf %75, %79 : vector<2x32xf32>
    %81 = math.tanh %80 : vector<2x32xf32>
    %cst_21 = arith.constant 1.000000e+00 : f32
    %82 = vector.broadcast %cst_21 : f32 to vector<2x32xf32>
    %83 = arith.subf %82, %74 : vector<2x32xf32>
    %84 = arith.mulf %83, %81 : vector<2x32xf32>
    %85 = arith.mulf %74, %62 : vector<2x32xf32>
    %86 = arith.addf %84, %85 : vector<2x32xf32>
    %c4 = arith.constant 4 : index
    %c0_22 = arith.constant 0 : index
    %87 = vector.load %arg17[%c4, %c0_22] : memref<20x32xf32, #tpu.memory_space<vmem>>, vector<2x32xf32>
    tpu.vector_store %arg17[%c4, %c0_22], %86 {strides = array<i32>} : memref<20x32xf32, #tpu.memory_space<vmem>>, vector<2x32xf32>,
    %cst_23 = arith.constant dense<0.000000e+00> : vector<2x128xf32>
    %88 = tpu.matmul %86, %4, %cst_23 {dimension_numbers = #tpu.dot_dimension_numbers<[1], [0], [0], [1], [0, 0, 1, 1], [], []>} : vector<2x32xf32>, vector<32x128xf32>, vector<2x128xf32> -> vector<2x128xf32>
    %89 = vector.extract_strided_slice %14 {offsets = [6, 0], sizes = [2, 64], strides = [1, 1]} : vector<20x64xf32> to vector<2x64xf32>
    %90 = vector.extract_strided_slice %88 {offsets = [0, 0], sizes = [2, 64], strides = [1, 1]} : vector<2x128xf32> to vector<2x64xf32>
    %91 = arith.addf %89, %90 : vector<2x64xf32>
    %92 = arith.negf %91 : vector<2x64xf32>
    %93 = math.exp %92 : vector<2x64xf32>
    %cst_24 = arith.constant 1.000000e+00 : f32
    %94 = vector.broadcast %cst_24 : f32 to vector<2x64xf32>
    %95 = arith.addf %94, %93 : vector<2x64xf32>
    %96 = arith.divf %94, %95 : vector<2x64xf32>
    %97 = vector.extract_strided_slice %96 {offsets = [0, 0], sizes = [2, 32], strides = [1, 1]} : vector<2x64xf32> to vector<2x32xf32>
    %98 = vector.extract_strided_slice %96 {offsets = [0, 32], sizes = [2, 32], strides = [1, 1]} : vector<2x64xf32> to vector<2x32xf32>
    %99 = vector.extract_strided_slice %15 {offsets = [6, 0], sizes = [2, 32], strides = [1, 1]} : vector<20x32xf32> to vector<2x32xf32>
    %100 = vector.extract_strided_slice %88 {offsets = [0, 64], sizes = [2, 32], strides = [1, 1]} : vector<2x128xf32> to vector<2x32xf32>
    %101 = vector.broadcast %5 : vector<1x32xf32> to vector<2x32xf32>
    %102 = arith.addf %100, %101 : vector<2x32xf32>
    %103 = arith.mulf %97, %102 : vector<2x32xf32>
    %104 = arith.addf %99, %103 : vector<2x32xf32>
    %105 = math.tanh %104 : vector<2x32xf32>
    %cst_25 = arith.constant 1.000000e+00 : f32
    %106 = vector.broadcast %cst_25 : f32 to vector<2x32xf32>
    %107 = arith.subf %106, %98 : vector<2x32xf32>
    %108 = arith.mulf %107, %105 : vector<2x32xf32>
    %109 = arith.mulf %98, %86 : vector<2x32xf32>
    %110 = arith.addf %108, %109 : vector<2x32xf32>
    %c6 = arith.constant 6 : index
    %c0_26 = arith.constant 0 : index
    %111 = vector.load %arg17[%c6, %c0_26] : memref<20x32xf32, #tpu.memory_space<vmem>>, vector<2x32xf32>
    tpu.vector_store %arg17[%c6, %c0_26], %110 {strides = array<i32>} : memref<20x32xf32, #tpu.memory_space<vmem>>, vector<2x32xf32>,
    %cst_27 = arith.constant dense<0.000000e+00> : vector<2x128xf32>
    %112 = tpu.matmul %110, %4, %cst_27 {dimension_numbers = #tpu.dot_dimension_numbers<[1], [0], [0], [1], [0, 0, 1, 1], [], []>} : vector<2x32xf32>, vector<32x128xf32>, vector<2x128xf32> -> vector<2x128xf32>
    %113 = vector.extract_strided_slice %14 {offsets = [8, 0], sizes = [2, 64], strides = [1, 1]} : vector<20x64xf32> to vector<2x64xf32>
    %114 = vector.extract_strided_slice %112 {offsets = [0, 0], sizes = [2, 64], strides = [1, 1]} : vector<2x128xf32> to vector<2x64xf32>
    %115 = arith.addf %113, %114 : vector<2x64xf32>
    %116 = arith.negf %115 : vector<2x64xf32>
    %117 = math.exp %116 : vector<2x64xf32>
    %cst_28 = arith.constant 1.000000e+00 : f32
    %118 = vector.broadcast %cst_28 : f32 to vector<2x64xf32>
    %119 = arith.addf %118, %117 : vector<2x64xf32>
    %120 = arith.divf %118, %119 : vector<2x64xf32>
    %121 = vector.extract_strided_slice %120 {offsets = [0, 0], sizes = [2, 32], strides = [1, 1]} : vector<2x64xf32> to vector<2x32xf32>
    %122 = vector.extract_strided_slice %120 {offsets = [0, 32], sizes = [2, 32], strides = [1, 1]} : vector<2x64xf32> to vector<2x32xf32>
    %123 = vector.extract_strided_slice %15 {offsets = [8, 0], sizes = [2, 32], strides = [1, 1]} : vector<20x32xf32> to vector<2x32xf32>
    %124 = vector.extract_strided_slice %112 {offsets = [0, 64], sizes = [2, 32], strides = [1, 1]} : vector<2x128xf32> to vector<2x32xf32>
    %125 = vector.broadcast %5 : vector<1x32xf32> to vector<2x32xf32>
    %126 = arith.addf %124, %125 : vector<2x32xf32>
    %127 = arith.mulf %121, %126 : vector<2x32xf32>
    %128 = arith.addf %123, %127 : vector<2x32xf32>
    %129 = math.tanh %128 : vector<2x32xf32>
    %cst_29 = arith.constant 1.000000e+00 : f32
    %130 = vector.broadcast %cst_29 : f32 to vector<2x32xf32>
    %131 = arith.subf %130, %122 : vector<2x32xf32>
    %132 = arith.mulf %131, %129 : vector<2x32xf32>
    %133 = arith.mulf %122, %110 : vector<2x32xf32>
    %134 = arith.addf %132, %133 : vector<2x32xf32>
    %c8 = arith.constant 8 : index
    %c0_30 = arith.constant 0 : index
    %135 = vector.load %arg17[%c8, %c0_30] : memref<20x32xf32, #tpu.memory_space<vmem>>, vector<2x32xf32>
    tpu.vector_store %arg17[%c8, %c0_30], %134 {strides = array<i32>} : memref<20x32xf32, #tpu.memory_space<vmem>>, vector<2x32xf32>,
    %cst_31 = arith.constant dense<0.000000e+00> : vector<2x128xf32>
    %136 = tpu.matmul %134, %4, %cst_31 {dimension_numbers = #tpu.dot_dimension_numbers<[1], [0], [0], [1], [0, 0, 1, 1], [], []>} : vector<2x32xf32>, vector<32x128xf32>, vector<2x128xf32> -> vector<2x128xf32>
    %137 = vector.extract_strided_slice %14 {offsets = [10, 0], sizes = [2, 64], strides = [1, 1]} : vector<20x64xf32> to vector<2x64xf32>
    %138 = vector.extract_strided_slice %136 {offsets = [0, 0], sizes = [2, 64], strides = [1, 1]} : vector<2x128xf32> to vector<2x64xf32>
    %139 = arith.addf %137, %138 : vector<2x64xf32>
    %140 = arith.negf %139 : vector<2x64xf32>
    %141 = math.exp %140 : vector<2x64xf32>
    %cst_32 = arith.constant 1.000000e+00 : f32
    %142 = vector.broadcast %cst_32 : f32 to vector<2x64xf32>
    %143 = arith.addf %142, %141 : vector<2x64xf32>
    %144 = arith.divf %142, %143 : vector<2x64xf32>
    %145 = vector.extract_strided_slice %144 {offsets = [0, 0], sizes = [2, 32], strides = [1, 1]} : vector<2x64xf32> to vector<2x32xf32>
    %146 = vector.extract_strided_slice %144 {offsets = [0, 32], sizes = [2, 32], strides = [1, 1]} : vector<2x64xf32> to vector<2x32xf32>
    %147 = vector.extract_strided_slice %15 {offsets = [10, 0], sizes = [2, 32], strides = [1, 1]} : vector<20x32xf32> to vector<2x32xf32>
    %148 = vector.extract_strided_slice %136 {offsets = [0, 64], sizes = [2, 32], strides = [1, 1]} : vector<2x128xf32> to vector<2x32xf32>
    %149 = vector.broadcast %5 : vector<1x32xf32> to vector<2x32xf32>
    %150 = arith.addf %148, %149 : vector<2x32xf32>
    %151 = arith.mulf %145, %150 : vector<2x32xf32>
    %152 = arith.addf %147, %151 : vector<2x32xf32>
    %153 = math.tanh %152 : vector<2x32xf32>
    %cst_33 = arith.constant 1.000000e+00 : f32
    %154 = vector.broadcast %cst_33 : f32 to vector<2x32xf32>
    %155 = arith.subf %154, %146 : vector<2x32xf32>
    %156 = arith.mulf %155, %153 : vector<2x32xf32>
    %157 = arith.mulf %146, %134 : vector<2x32xf32>
    %158 = arith.addf %156, %157 : vector<2x32xf32>
    %c10 = arith.constant 10 : index
    %c0_34 = arith.constant 0 : index
    %159 = vector.load %arg17[%c10, %c0_34] : memref<20x32xf32, #tpu.memory_space<vmem>>, vector<2x32xf32>
    tpu.vector_store %arg17[%c10, %c0_34], %158 {strides = array<i32>} : memref<20x32xf32, #tpu.memory_space<vmem>>, vector<2x32xf32>,
    %cst_35 = arith.constant dense<0.000000e+00> : vector<2x128xf32>
    %160 = tpu.matmul %158, %4, %cst_35 {dimension_numbers = #tpu.dot_dimension_numbers<[1], [0], [0], [1], [0, 0, 1, 1], [], []>} : vector<2x32xf32>, vector<32x128xf32>, vector<2x128xf32> -> vector<2x128xf32>
    %161 = vector.extract_strided_slice %14 {offsets = [12, 0], sizes = [2, 64], strides = [1, 1]} : vector<20x64xf32> to vector<2x64xf32>
    %162 = vector.extract_strided_slice %160 {offsets = [0, 0], sizes = [2, 64], strides = [1, 1]} : vector<2x128xf32> to vector<2x64xf32>
    %163 = arith.addf %161, %162 : vector<2x64xf32>
    %164 = arith.negf %163 : vector<2x64xf32>
    %165 = math.exp %164 : vector<2x64xf32>
    %cst_36 = arith.constant 1.000000e+00 : f32
    %166 = vector.broadcast %cst_36 : f32 to vector<2x64xf32>
    %167 = arith.addf %166, %165 : vector<2x64xf32>
    %168 = arith.divf %166, %167 : vector<2x64xf32>
    %169 = vector.extract_strided_slice %168 {offsets = [0, 0], sizes = [2, 32], strides = [1, 1]} : vector<2x64xf32> to vector<2x32xf32>
    %170 = vector.extract_strided_slice %168 {offsets = [0, 32], sizes = [2, 32], strides = [1, 1]} : vector<2x64xf32> to vector<2x32xf32>
    %171 = vector.extract_strided_slice %15 {offsets = [12, 0], sizes = [2, 32], strides = [1, 1]} : vector<20x32xf32> to vector<2x32xf32>
    %172 = vector.extract_strided_slice %160 {offsets = [0, 64], sizes = [2, 32], strides = [1, 1]} : vector<2x128xf32> to vector<2x32xf32>
    %173 = vector.broadcast %5 : vector<1x32xf32> to vector<2x32xf32>
    %174 = arith.addf %172, %173 : vector<2x32xf32>
    %175 = arith.mulf %169, %174 : vector<2x32xf32>
    %176 = arith.addf %171, %175 : vector<2x32xf32>
    %177 = math.tanh %176 : vector<2x32xf32>
    %cst_37 = arith.constant 1.000000e+00 : f32
    %178 = vector.broadcast %cst_37 : f32 to vector<2x32xf32>
    %179 = arith.subf %178, %170 : vector<2x32xf32>
    %180 = arith.mulf %179, %177 : vector<2x32xf32>
    %181 = arith.mulf %170, %158 : vector<2x32xf32>
    %182 = arith.addf %180, %181 : vector<2x32xf32>
    %c12 = arith.constant 12 : index
    %c0_38 = arith.constant 0 : index
    %183 = vector.load %arg17[%c12, %c0_38] : memref<20x32xf32, #tpu.memory_space<vmem>>, vector<2x32xf32>
    tpu.vector_store %arg17[%c12, %c0_38], %182 {strides = array<i32>} : memref<20x32xf32, #tpu.memory_space<vmem>>, vector<2x32xf32>,
    %cst_39 = arith.constant dense<0.000000e+00> : vector<2x128xf32>
    %184 = tpu.matmul %182, %4, %cst_39 {dimension_numbers = #tpu.dot_dimension_numbers<[1], [0], [0], [1], [0, 0, 1, 1], [], []>} : vector<2x32xf32>, vector<32x128xf32>, vector<2x128xf32> -> vector<2x128xf32>
    %185 = vector.extract_strided_slice %14 {offsets = [14, 0], sizes = [2, 64], strides = [1, 1]} : vector<20x64xf32> to vector<2x64xf32>
    %186 = vector.extract_strided_slice %184 {offsets = [0, 0], sizes = [2, 64], strides = [1, 1]} : vector<2x128xf32> to vector<2x64xf32>
    %187 = arith.addf %185, %186 : vector<2x64xf32>
    %188 = arith.negf %187 : vector<2x64xf32>
    %189 = math.exp %188 : vector<2x64xf32>
    %cst_40 = arith.constant 1.000000e+00 : f32
    %190 = vector.broadcast %cst_40 : f32 to vector<2x64xf32>
    %191 = arith.addf %190, %189 : vector<2x64xf32>
    %192 = arith.divf %190, %191 : vector<2x64xf32>
    %193 = vector.extract_strided_slice %192 {offsets = [0, 0], sizes = [2, 32], strides = [1, 1]} : vector<2x64xf32> to vector<2x32xf32>
    %194 = vector.extract_strided_slice %192 {offsets = [0, 32], sizes = [2, 32], strides = [1, 1]} : vector<2x64xf32> to vector<2x32xf32>
    %195 = vector.extract_strided_slice %15 {offsets = [14, 0], sizes = [2, 32], strides = [1, 1]} : vector<20x32xf32> to vector<2x32xf32>
    %196 = vector.extract_strided_slice %184 {offsets = [0, 64], sizes = [2, 32], strides = [1, 1]} : vector<2x128xf32> to vector<2x32xf32>
    %197 = vector.broadcast %5 : vector<1x32xf32> to vector<2x32xf32>
    %198 = arith.addf %196, %197 : vector<2x32xf32>
    %199 = arith.mulf %193, %198 : vector<2x32xf32>
    %200 = arith.addf %195, %199 : vector<2x32xf32>
    %201 = math.tanh %200 : vector<2x32xf32>
    %cst_41 = arith.constant 1.000000e+00 : f32
    %202 = vector.broadcast %cst_41 : f32 to vector<2x32xf32>
    %203 = arith.subf %202, %194 : vector<2x32xf32>
    %204 = arith.mulf %203, %201 : vector<2x32xf32>
    %205 = arith.mulf %194, %182 : vector<2x32xf32>
    %206 = arith.addf %204, %205 : vector<2x32xf32>
    %c14 = arith.constant 14 : index
    %c0_42 = arith.constant 0 : index
    %207 = vector.load %arg17[%c14, %c0_42] : memref<20x32xf32, #tpu.memory_space<vmem>>, vector<2x32xf32>
    tpu.vector_store %arg17[%c14, %c0_42], %206 {strides = array<i32>} : memref<20x32xf32, #tpu.memory_space<vmem>>, vector<2x32xf32>,
    %cst_43 = arith.constant dense<0.000000e+00> : vector<2x128xf32>
    %208 = tpu.matmul %206, %4, %cst_43 {dimension_numbers = #tpu.dot_dimension_numbers<[1], [0], [0], [1], [0, 0, 1, 1], [], []>} : vector<2x32xf32>, vector<32x128xf32>, vector<2x128xf32> -> vector<2x128xf32>
    %209 = vector.extract_strided_slice %14 {offsets = [16, 0], sizes = [2, 64], strides = [1, 1]} : vector<20x64xf32> to vector<2x64xf32>
    %210 = vector.extract_strided_slice %208 {offsets = [0, 0], sizes = [2, 64], strides = [1, 1]} : vector<2x128xf32> to vector<2x64xf32>
    %211 = arith.addf %209, %210 : vector<2x64xf32>
    %212 = arith.negf %211 : vector<2x64xf32>
    %213 = math.exp %212 : vector<2x64xf32>
    %cst_44 = arith.constant 1.000000e+00 : f32
    %214 = vector.broadcast %cst_44 : f32 to vector<2x64xf32>
    %215 = arith.addf %214, %213 : vector<2x64xf32>
    %216 = arith.divf %214, %215 : vector<2x64xf32>
    %217 = vector.extract_strided_slice %216 {offsets = [0, 0], sizes = [2, 32], strides = [1, 1]} : vector<2x64xf32> to vector<2x32xf32>
    %218 = vector.extract_strided_slice %216 {offsets = [0, 32], sizes = [2, 32], strides = [1, 1]} : vector<2x64xf32> to vector<2x32xf32>
    %219 = vector.extract_strided_slice %15 {offsets = [16, 0], sizes = [2, 32], strides = [1, 1]} : vector<20x32xf32> to vector<2x32xf32>
    %220 = vector.extract_strided_slice %208 {offsets = [0, 64], sizes = [2, 32], strides = [1, 1]} : vector<2x128xf32> to vector<2x32xf32>
    %221 = vector.broadcast %5 : vector<1x32xf32> to vector<2x32xf32>
    %222 = arith.addf %220, %221 : vector<2x32xf32>
    %223 = arith.mulf %217, %222 : vector<2x32xf32>
    %224 = arith.addf %219, %223 : vector<2x32xf32>
    %225 = math.tanh %224 : vector<2x32xf32>
    %cst_45 = arith.constant 1.000000e+00 : f32
    %226 = vector.broadcast %cst_45 : f32 to vector<2x32xf32>
    %227 = arith.subf %226, %218 : vector<2x32xf32>
    %228 = arith.mulf %227, %225 : vector<2x32xf32>
    %229 = arith.mulf %218, %206 : vector<2x32xf32>
    %230 = arith.addf %228, %229 : vector<2x32xf32>
    %c16 = arith.constant 16 : index
    %c0_46 = arith.constant 0 : index
    %231 = vector.load %arg17[%c16, %c0_46] : memref<20x32xf32, #tpu.memory_space<vmem>>, vector<2x32xf32>
    tpu.vector_store %arg17[%c16, %c0_46], %230 {strides = array<i32>} : memref<20x32xf32, #tpu.memory_space<vmem>>, vector<2x32xf32>,
    %cst_47 = arith.constant dense<0.000000e+00> : vector<2x128xf32>
    %232 = tpu.matmul %230, %4, %cst_47 {dimension_numbers = #tpu.dot_dimension_numbers<[1], [0], [0], [1], [0, 0, 1, 1], [], []>} : vector<2x32xf32>, vector<32x128xf32>, vector<2x128xf32> -> vector<2x128xf32>
    %233 = vector.extract_strided_slice %14 {offsets = [18, 0], sizes = [2, 64], strides = [1, 1]} : vector<20x64xf32> to vector<2x64xf32>
    %234 = vector.extract_strided_slice %232 {offsets = [0, 0], sizes = [2, 64], strides = [1, 1]} : vector<2x128xf32> to vector<2x64xf32>
    %235 = arith.addf %233, %234 : vector<2x64xf32>
    %236 = arith.negf %235 : vector<2x64xf32>
    %237 = math.exp %236 : vector<2x64xf32>
    %cst_48 = arith.constant 1.000000e+00 : f32
    %238 = vector.broadcast %cst_48 : f32 to vector<2x64xf32>
    %239 = arith.addf %238, %237 : vector<2x64xf32>
    %240 = arith.divf %238, %239 : vector<2x64xf32>
    %241 = vector.extract_strided_slice %240 {offsets = [0, 0], sizes = [2, 32], strides = [1, 1]} : vector<2x64xf32> to vector<2x32xf32>
    %242 = vector.extract_strided_slice %240 {offsets = [0, 32], sizes = [2, 32], strides = [1, 1]} : vector<2x64xf32> to vector<2x32xf32>
    %243 = vector.extract_strided_slice %15 {offsets = [18, 0], sizes = [2, 32], strides = [1, 1]} : vector<20x32xf32> to vector<2x32xf32>
    %244 = vector.extract_strided_slice %232 {offsets = [0, 64], sizes = [2, 32], strides = [1, 1]} : vector<2x128xf32> to vector<2x32xf32>
    %245 = vector.broadcast %5 : vector<1x32xf32> to vector<2x32xf32>
    %246 = arith.addf %244, %245 : vector<2x32xf32>
    %247 = arith.mulf %241, %246 : vector<2x32xf32>
    %248 = arith.addf %243, %247 : vector<2x32xf32>
    %249 = math.tanh %248 : vector<2x32xf32>
    %cst_49 = arith.constant 1.000000e+00 : f32
    %250 = vector.broadcast %cst_49 : f32 to vector<2x32xf32>
    %251 = arith.subf %250, %242 : vector<2x32xf32>
    %252 = arith.mulf %251, %249 : vector<2x32xf32>
    %253 = arith.mulf %242, %230 : vector<2x32xf32>
    %254 = arith.addf %252, %253 : vector<2x32xf32>
    %c18 = arith.constant 18 : index
    %c0_50 = arith.constant 0 : index
    %255 = vector.load %arg17[%c18, %c0_50] : memref<20x32xf32, #tpu.memory_space<vmem>>, vector<2x32xf32>
    tpu.vector_store %arg17[%c18, %c0_50], %254 {strides = array<i32>} : memref<20x32xf32, #tpu.memory_space<vmem>>, vector<2x32xf32>,
    %c0_51 = arith.constant 0 : index
    %c0_52 = arith.constant 0 : index
    %256 = vector.load %arg1[%c0_51, %c0_52] : memref<16x1xi32, #tpu.memory_space<vmem>>, vector<16x1xi32>
    %c0_53 = arith.constant 0 : index
    %c0_54 = arith.constant 0 : index
    %257 = vector.load %arg6[%c0_53, %c0_54] : memref<128x128xf32, #tpu.memory_space<vmem>>, vector<128x128xf32>
    %c0_55 = arith.constant 0 : index
    %c0_56 = arith.constant 0 : index
    %258 = vector.load %arg7[%c0_55, %c0_56] : memref<1x128xf32, #tpu.memory_space<vmem>>, vector<1x128xf32>
    %c0_57 = arith.constant 0 : index
    %c0_58 = arith.constant 0 : index
    %259 = vector.load %arg8[%c0_57, %c0_58] : memref<32x128xf32, #tpu.memory_space<vmem>>, vector<32x128xf32>
    %c0_59 = arith.constant 0 : index
    %c0_60 = arith.constant 0 : index
    %260 = vector.load %arg9[%c0_59, %c0_60] : memref<1x32xf32, #tpu.memory_space<vmem>>, vector<1x32xf32>
    %261 = tpu.iota {dimensions = array<i32: 1>} : vector<16x128xi32>
    %262 = vector.broadcast %256 : vector<16x1xi32> to vector<16x128xi32>
    %263 = arith.cmpi eq, %262, %261 : vector<16x128xi32>
    %264 = arith.extui %263 : vector<16x128xi1> to vector<16x128xi32>
    %265 = arith.sitofp %264 : vector<16x128xi32> to vector<16x128xf32>
    %cst_61 = arith.constant dense<0.000000e+00> : vector<16x128xf32>
    %266 = tpu.matmul %265, %257, %cst_61 {dimension_numbers = #tpu.dot_dimension_numbers<[1], [0], [0], [1], [0, 0, 1, 1], [], []>} : vector<16x128xf32>, vector<128x128xf32>, vector<16x128xf32> -> vector<16x128xf32>
    %267 = vector.broadcast %258 : vector<1x128xf32> to vector<16x128xf32>
    %268 = arith.addf %266, %267 : vector<16x128xf32>
    %269 = vector.extract_strided_slice %268 {offsets = [0, 0], sizes = [16, 64], strides = [1, 1]} : vector<16x128xf32> to vector<16x64xf32>
    %270 = vector.extract_strided_slice %268 {offsets = [0, 64], sizes = [16, 32], strides = [1, 1]} : vector<16x128xf32> to vector<16x32xf32>
    %cst_62 = arith.constant dense<0.000000e+00> : vector<2x128xf32>
    %271 = tpu.matmul %254, %259, %cst_62 {dimension_numbers = #tpu.dot_dimension_numbers<[1], [0], [0], [1], [0, 0, 1, 1], [], []>} : vector<2x32xf32>, vector<32x128xf32>, vector<2x128xf32> -> vector<2x128xf32>
    %272 = vector.extract_strided_slice %269 {offsets = [0, 0], sizes = [2, 64], strides = [1, 1]} : vector<16x64xf32> to vector<2x64xf32>
    %273 = vector.extract_strided_slice %271 {offsets = [0, 0], sizes = [2, 64], strides = [1, 1]} : vector<2x128xf32> to vector<2x64xf32>
    %274 = arith.addf %272, %273 : vector<2x64xf32>
    %275 = arith.negf %274 : vector<2x64xf32>
    %276 = math.exp %275 : vector<2x64xf32>
    %cst_63 = arith.constant 1.000000e+00 : f32
    %277 = vector.broadcast %cst_63 : f32 to vector<2x64xf32>
    %278 = arith.addf %277, %276 : vector<2x64xf32>
    %279 = arith.divf %277, %278 : vector<2x64xf32>
    %280 = vector.extract_strided_slice %279 {offsets = [0, 0], sizes = [2, 32], strides = [1, 1]} : vector<2x64xf32> to vector<2x32xf32>
    %281 = vector.extract_strided_slice %279 {offsets = [0, 32], sizes = [2, 32], strides = [1, 1]} : vector<2x64xf32> to vector<2x32xf32>
    %282 = vector.extract_strided_slice %270 {offsets = [0, 0], sizes = [2, 32], strides = [1, 1]} : vector<16x32xf32> to vector<2x32xf32>
    %283 = vector.extract_strided_slice %271 {offsets = [0, 64], sizes = [2, 32], strides = [1, 1]} : vector<2x128xf32> to vector<2x32xf32>
    %284 = vector.broadcast %260 : vector<1x32xf32> to vector<2x32xf32>
    %285 = arith.addf %283, %284 : vector<2x32xf32>
    %286 = arith.mulf %280, %285 : vector<2x32xf32>
    %287 = arith.addf %282, %286 : vector<2x32xf32>
    %288 = math.tanh %287 : vector<2x32xf32>
    %cst_64 = arith.constant 1.000000e+00 : f32
    %289 = vector.broadcast %cst_64 : f32 to vector<2x32xf32>
    %290 = arith.subf %289, %281 : vector<2x32xf32>
    %291 = arith.mulf %290, %288 : vector<2x32xf32>
    %292 = arith.mulf %281, %254 : vector<2x32xf32>
    %293 = arith.addf %291, %292 : vector<2x32xf32>
    %c0_65 = arith.constant 0 : index
    %c0_66 = arith.constant 0 : index
    %294 = vector.load %arg18[%c0_65, %c0_66] : memref<16x32xf32, #tpu.memory_space<vmem>>, vector<2x32xf32>
    tpu.vector_store %arg18[%c0_65, %c0_66], %293 {strides = array<i32>} : memref<16x32xf32, #tpu.memory_space<vmem>>, vector<2x32xf32>,
    %cst_67 = arith.constant dense<0.000000e+00> : vector<2x128xf32>
    %295 = tpu.matmul %293, %259, %cst_67 {dimension_numbers = #tpu.dot_dimension_numbers<[1], [0], [0], [1], [0, 0, 1, 1], [], []>} : vector<2x32xf32>, vector<32x128xf32>, vector<2x128xf32> -> vector<2x128xf32>
    %296 = vector.extract_strided_slice %269 {offsets = [2, 0], sizes = [2, 64], strides = [1, 1]} : vector<16x64xf32> to vector<2x64xf32>
    %297 = vector.extract_strided_slice %295 {offsets = [0, 0], sizes = [2, 64], strides = [1, 1]} : vector<2x128xf32> to vector<2x64xf32>
    %298 = arith.addf %296, %297 : vector<2x64xf32>
    %299 = arith.negf %298 : vector<2x64xf32>
    %300 = math.exp %299 : vector<2x64xf32>
    %cst_68 = arith.constant 1.000000e+00 : f32
    %301 = vector.broadcast %cst_68 : f32 to vector<2x64xf32>
    %302 = arith.addf %301, %300 : vector<2x64xf32>
    %303 = arith.divf %301, %302 : vector<2x64xf32>
    %304 = vector.extract_strided_slice %303 {offsets = [0, 0], sizes = [2, 32], strides = [1, 1]} : vector<2x64xf32> to vector<2x32xf32>
    %305 = vector.extract_strided_slice %303 {offsets = [0, 32], sizes = [2, 32], strides = [1, 1]} : vector<2x64xf32> to vector<2x32xf32>
    %306 = vector.extract_strided_slice %270 {offsets = [2, 0], sizes = [2, 32], strides = [1, 1]} : vector<16x32xf32> to vector<2x32xf32>
    %307 = vector.extract_strided_slice %295 {offsets = [0, 64], sizes = [2, 32], strides = [1, 1]} : vector<2x128xf32> to vector<2x32xf32>
    %308 = vector.broadcast %260 : vector<1x32xf32> to vector<2x32xf32>
    %309 = arith.addf %307, %308 : vector<2x32xf32>
    %310 = arith.mulf %304, %309 : vector<2x32xf32>
    %311 = arith.addf %306, %310 : vector<2x32xf32>
    %312 = math.tanh %311 : vector<2x32xf32>
    %cst_69 = arith.constant 1.000000e+00 : f32
    %313 = vector.broadcast %cst_69 : f32 to vector<2x32xf32>
    %314 = arith.subf %313, %305 : vector<2x32xf32>
    %315 = arith.mulf %314, %312 : vector<2x32xf32>
    %316 = arith.mulf %305, %293 : vector<2x32xf32>
    %317 = arith.addf %315, %316 : vector<2x32xf32>
    %c2_70 = arith.constant 2 : index
    %c0_71 = arith.constant 0 : index
    %318 = vector.load %arg18[%c2_70, %c0_71] : memref<16x32xf32, #tpu.memory_space<vmem>>, vector<2x32xf32>
    tpu.vector_store %arg18[%c2_70, %c0_71], %317 {strides = array<i32>} : memref<16x32xf32, #tpu.memory_space<vmem>>, vector<2x32xf32>,
    %cst_72 = arith.constant dense<0.000000e+00> : vector<2x128xf32>
    %319 = tpu.matmul %317, %259, %cst_72 {dimension_numbers = #tpu.dot_dimension_numbers<[1], [0], [0], [1], [0, 0, 1, 1], [], []>} : vector<2x32xf32>, vector<32x128xf32>, vector<2x128xf32> -> vector<2x128xf32>
    %320 = vector.extract_strided_slice %269 {offsets = [4, 0], sizes = [2, 64], strides = [1, 1]} : vector<16x64xf32> to vector<2x64xf32>
    %321 = vector.extract_strided_slice %319 {offsets = [0, 0], sizes = [2, 64], strides = [1, 1]} : vector<2x128xf32> to vector<2x64xf32>
    %322 = arith.addf %320, %321 : vector<2x64xf32>
    %323 = arith.negf %322 : vector<2x64xf32>
    %324 = math.exp %323 : vector<2x64xf32>
    %cst_73 = arith.constant 1.000000e+00 : f32
    %325 = vector.broadcast %cst_73 : f32 to vector<2x64xf32>
    %326 = arith.addf %325, %324 : vector<2x64xf32>
    %327 = arith.divf %325, %326 : vector<2x64xf32>
    %328 = vector.extract_strided_slice %327 {offsets = [0, 0], sizes = [2, 32], strides = [1, 1]} : vector<2x64xf32> to vector<2x32xf32>
    %329 = vector.extract_strided_slice %327 {offsets = [0, 32], sizes = [2, 32], strides = [1, 1]} : vector<2x64xf32> to vector<2x32xf32>
    %330 = vector.extract_strided_slice %270 {offsets = [4, 0], sizes = [2, 32], strides = [1, 1]} : vector<16x32xf32> to vector<2x32xf32>
    %331 = vector.extract_strided_slice %319 {offsets = [0, 64], sizes = [2, 32], strides = [1, 1]} : vector<2x128xf32> to vector<2x32xf32>
    %332 = vector.broadcast %260 : vector<1x32xf32> to vector<2x32xf32>
    %333 = arith.addf %331, %332 : vector<2x32xf32>
    %334 = arith.mulf %328, %333 : vector<2x32xf32>
    %335 = arith.addf %330, %334 : vector<2x32xf32>
    %336 = math.tanh %335 : vector<2x32xf32>
    %cst_74 = arith.constant 1.000000e+00 : f32
    %337 = vector.broadcast %cst_74 : f32 to vector<2x32xf32>
    %338 = arith.subf %337, %329 : vector<2x32xf32>
    %339 = arith.mulf %338, %336 : vector<2x32xf32>
    %340 = arith.mulf %329, %317 : vector<2x32xf32>
    %341 = arith.addf %339, %340 : vector<2x32xf32>
    %c4_75 = arith.constant 4 : index
    %c0_76 = arith.constant 0 : index
    %342 = vector.load %arg18[%c4_75, %c0_76] : memref<16x32xf32, #tpu.memory_space<vmem>>, vector<2x32xf32>
    tpu.vector_store %arg18[%c4_75, %c0_76], %341 {strides = array<i32>} : memref<16x32xf32, #tpu.memory_space<vmem>>, vector<2x32xf32>,
    %cst_77 = arith.constant dense<0.000000e+00> : vector<2x128xf32>
    %343 = tpu.matmul %341, %259, %cst_77 {dimension_numbers = #tpu.dot_dimension_numbers<[1], [0], [0], [1], [0, 0, 1, 1], [], []>} : vector<2x32xf32>, vector<32x128xf32>, vector<2x128xf32> -> vector<2x128xf32>
    %344 = vector.extract_strided_slice %269 {offsets = [6, 0], sizes = [2, 64], strides = [1, 1]} : vector<16x64xf32> to vector<2x64xf32>
    %345 = vector.extract_strided_slice %343 {offsets = [0, 0], sizes = [2, 64], strides = [1, 1]} : vector<2x128xf32> to vector<2x64xf32>
    %346 = arith.addf %344, %345 : vector<2x64xf32>
    %347 = arith.negf %346 : vector<2x64xf32>
    %348 = math.exp %347 : vector<2x64xf32>
    %cst_78 = arith.constant 1.000000e+00 : f32
    %349 = vector.broadcast %cst_78 : f32 to vector<2x64xf32>
    %350 = arith.addf %349, %348 : vector<2x64xf32>
    %351 = arith.divf %349, %350 : vector<2x64xf32>
    %352 = vector.extract_strided_slice %351 {offsets = [0, 0], sizes = [2, 32], strides = [1, 1]} : vector<2x64xf32> to vector<2x32xf32>
    %353 = vector.extract_strided_slice %351 {offsets = [0, 32], sizes = [2, 32], strides = [1, 1]} : vector<2x64xf32> to vector<2x32xf32>
    %354 = vector.extract_strided_slice %270 {offsets = [6, 0], sizes = [2, 32], strides = [1, 1]} : vector<16x32xf32> to vector<2x32xf32>
    %355 = vector.extract_strided_slice %343 {offsets = [0, 64], sizes = [2, 32], strides = [1, 1]} : vector<2x128xf32> to vector<2x32xf32>
    %356 = vector.broadcast %260 : vector<1x32xf32> to vector<2x32xf32>
    %357 = arith.addf %355, %356 : vector<2x32xf32>
    %358 = arith.mulf %352, %357 : vector<2x32xf32>
    %359 = arith.addf %354, %358 : vector<2x32xf32>
    %360 = math.tanh %359 : vector<2x32xf32>
    %cst_79 = arith.constant 1.000000e+00 : f32
    %361 = vector.broadcast %cst_79 : f32 to vector<2x32xf32>
    %362 = arith.subf %361, %353 : vector<2x32xf32>
    %363 = arith.mulf %362, %360 : vector<2x32xf32>
    %364 = arith.mulf %353, %341 : vector<2x32xf32>
    %365 = arith.addf %363, %364 : vector<2x32xf32>
    %c6_80 = arith.constant 6 : index
    %c0_81 = arith.constant 0 : index
    %366 = vector.load %arg18[%c6_80, %c0_81] : memref<16x32xf32, #tpu.memory_space<vmem>>, vector<2x32xf32>
    tpu.vector_store %arg18[%c6_80, %c0_81], %365 {strides = array<i32>} : memref<16x32xf32, #tpu.memory_space<vmem>>, vector<2x32xf32>,
    %cst_82 = arith.constant dense<0.000000e+00> : vector<2x128xf32>
    %367 = tpu.matmul %365, %259, %cst_82 {dimension_numbers = #tpu.dot_dimension_numbers<[1], [0], [0], [1], [0, 0, 1, 1], [], []>} : vector<2x32xf32>, vector<32x128xf32>, vector<2x128xf32> -> vector<2x128xf32>
    %368 = vector.extract_strided_slice %269 {offsets = [8, 0], sizes = [2, 64], strides = [1, 1]} : vector<16x64xf32> to vector<2x64xf32>
    %369 = vector.extract_strided_slice %367 {offsets = [0, 0], sizes = [2, 64], strides = [1, 1]} : vector<2x128xf32> to vector<2x64xf32>
    %370 = arith.addf %368, %369 : vector<2x64xf32>
    %371 = arith.negf %370 : vector<2x64xf32>
    %372 = math.exp %371 : vector<2x64xf32>
    %cst_83 = arith.constant 1.000000e+00 : f32
    %373 = vector.broadcast %cst_83 : f32 to vector<2x64xf32>
    %374 = arith.addf %373, %372 : vector<2x64xf32>
    %375 = arith.divf %373, %374 : vector<2x64xf32>
    %376 = vector.extract_strided_slice %375 {offsets = [0, 0], sizes = [2, 32], strides = [1, 1]} : vector<2x64xf32> to vector<2x32xf32>
    %377 = vector.extract_strided_slice %375 {offsets = [0, 32], sizes = [2, 32], strides = [1, 1]} : vector<2x64xf32> to vector<2x32xf32>
    %378 = vector.extract_strided_slice %270 {offsets = [8, 0], sizes = [2, 32], strides = [1, 1]} : vector<16x32xf32> to vector<2x32xf32>
    %379 = vector.extract_strided_slice %367 {offsets = [0, 64], sizes = [2, 32], strides = [1, 1]} : vector<2x128xf32> to vector<2x32xf32>
    %380 = vector.broadcast %260 : vector<1x32xf32> to vector<2x32xf32>
    %381 = arith.addf %379, %380 : vector<2x32xf32>
    %382 = arith.mulf %376, %381 : vector<2x32xf32>
    %383 = arith.addf %378, %382 : vector<2x32xf32>
    %384 = math.tanh %383 : vector<2x32xf32>
    %cst_84 = arith.constant 1.000000e+00 : f32
    %385 = vector.broadcast %cst_84 : f32 to vector<2x32xf32>
    %386 = arith.subf %385, %377 : vector<2x32xf32>
    %387 = arith.mulf %386, %384 : vector<2x32xf32>
    %388 = arith.mulf %377, %365 : vector<2x32xf32>
    %389 = arith.addf %387, %388 : vector<2x32xf32>
    %c8_85 = arith.constant 8 : index
    %c0_86 = arith.constant 0 : index
    %390 = vector.load %arg18[%c8_85, %c0_86] : memref<16x32xf32, #tpu.memory_space<vmem>>, vector<2x32xf32>
    tpu.vector_store %arg18[%c8_85, %c0_86], %389 {strides = array<i32>} : memref<16x32xf32, #tpu.memory_space<vmem>>, vector<2x32xf32>,
    %cst_87 = arith.constant dense<0.000000e+00> : vector<2x128xf32>
    %391 = tpu.matmul %389, %259, %cst_87 {dimension_numbers = #tpu.dot_dimension_numbers<[1], [0], [0], [1], [0, 0, 1, 1], [], []>} : vector<2x32xf32>, vector<32x128xf32>, vector<2x128xf32> -> vector<2x128xf32>
    %392 = vector.extract_strided_slice %269 {offsets = [10, 0], sizes = [2, 64], strides = [1, 1]} : vector<16x64xf32> to vector<2x64xf32>
    %393 = vector.extract_strided_slice %391 {offsets = [0, 0], sizes = [2, 64], strides = [1, 1]} : vector<2x128xf32> to vector<2x64xf32>
    %394 = arith.addf %392, %393 : vector<2x64xf32>
    %395 = arith.negf %394 : vector<2x64xf32>
    %396 = math.exp %395 : vector<2x64xf32>
    %cst_88 = arith.constant 1.000000e+00 : f32
    %397 = vector.broadcast %cst_88 : f32 to vector<2x64xf32>
    %398 = arith.addf %397, %396 : vector<2x64xf32>
    %399 = arith.divf %397, %398 : vector<2x64xf32>
    %400 = vector.extract_strided_slice %399 {offsets = [0, 0], sizes = [2, 32], strides = [1, 1]} : vector<2x64xf32> to vector<2x32xf32>
    %401 = vector.extract_strided_slice %399 {offsets = [0, 32], sizes = [2, 32], strides = [1, 1]} : vector<2x64xf32> to vector<2x32xf32>
    %402 = vector.extract_strided_slice %270 {offsets = [10, 0], sizes = [2, 32], strides = [1, 1]} : vector<16x32xf32> to vector<2x32xf32>
    %403 = vector.extract_strided_slice %391 {offsets = [0, 64], sizes = [2, 32], strides = [1, 1]} : vector<2x128xf32> to vector<2x32xf32>
    %404 = vector.broadcast %260 : vector<1x32xf32> to vector<2x32xf32>
    %405 = arith.addf %403, %404 : vector<2x32xf32>
    %406 = arith.mulf %400, %405 : vector<2x32xf32>
    %407 = arith.addf %402, %406 : vector<2x32xf32>
    %408 = math.tanh %407 : vector<2x32xf32>
    %cst_89 = arith.constant 1.000000e+00 : f32
    %409 = vector.broadcast %cst_89 : f32 to vector<2x32xf32>
    %410 = arith.subf %409, %401 : vector<2x32xf32>
    %411 = arith.mulf %410, %408 : vector<2x32xf32>
    %412 = arith.mulf %401, %389 : vector<2x32xf32>
    %413 = arith.addf %411, %412 : vector<2x32xf32>
    %c10_90 = arith.constant 10 : index
    %c0_91 = arith.constant 0 : index
    %414 = vector.load %arg18[%c10_90, %c0_91] : memref<16x32xf32, #tpu.memory_space<vmem>>, vector<2x32xf32>
    tpu.vector_store %arg18[%c10_90, %c0_91], %413 {strides = array<i32>} : memref<16x32xf32, #tpu.memory_space<vmem>>, vector<2x32xf32>,
    %cst_92 = arith.constant dense<0.000000e+00> : vector<2x128xf32>
    %415 = tpu.matmul %413, %259, %cst_92 {dimension_numbers = #tpu.dot_dimension_numbers<[1], [0], [0], [1], [0, 0, 1, 1], [], []>} : vector<2x32xf32>, vector<32x128xf32>, vector<2x128xf32> -> vector<2x128xf32>
    %416 = vector.extract_strided_slice %269 {offsets = [12, 0], sizes = [2, 64], strides = [1, 1]} : vector<16x64xf32> to vector<2x64xf32>
    %417 = vector.extract_strided_slice %415 {offsets = [0, 0], sizes = [2, 64], strides = [1, 1]} : vector<2x128xf32> to vector<2x64xf32>
    %418 = arith.addf %416, %417 : vector<2x64xf32>
    %419 = arith.negf %418 : vector<2x64xf32>
    %420 = math.exp %419 : vector<2x64xf32>
    %cst_93 = arith.constant 1.000000e+00 : f32
    %421 = vector.broadcast %cst_93 : f32 to vector<2x64xf32>
    %422 = arith.addf %421, %420 : vector<2x64xf32>
    %423 = arith.divf %421, %422 : vector<2x64xf32>
    %424 = vector.extract_strided_slice %423 {offsets = [0, 0], sizes = [2, 32], strides = [1, 1]} : vector<2x64xf32> to vector<2x32xf32>
    %425 = vector.extract_strided_slice %423 {offsets = [0, 32], sizes = [2, 32], strides = [1, 1]} : vector<2x64xf32> to vector<2x32xf32>
    %426 = vector.extract_strided_slice %270 {offsets = [12, 0], sizes = [2, 32], strides = [1, 1]} : vector<16x32xf32> to vector<2x32xf32>
    %427 = vector.extract_strided_slice %415 {offsets = [0, 64], sizes = [2, 32], strides = [1, 1]} : vector<2x128xf32> to vector<2x32xf32>
    %428 = vector.broadcast %260 : vector<1x32xf32> to vector<2x32xf32>
    %429 = arith.addf %427, %428 : vector<2x32xf32>
    %430 = arith.mulf %424, %429 : vector<2x32xf32>
    %431 = arith.addf %426, %430 : vector<2x32xf32>
    %432 = math.tanh %431 : vector<2x32xf32>
    %cst_94 = arith.constant 1.000000e+00 : f32
    %433 = vector.broadcast %cst_94 : f32 to vector<2x32xf32>
    %434 = arith.subf %433, %425 : vector<2x32xf32>
    %435 = arith.mulf %434, %432 : vector<2x32xf32>
    %436 = arith.mulf %425, %413 : vector<2x32xf32>
    %437 = arith.addf %435, %436 : vector<2x32xf32>
    %c12_95 = arith.constant 12 : index
    %c0_96 = arith.constant 0 : index
    %438 = vector.load %arg18[%c12_95, %c0_96] : memref<16x32xf32, #tpu.memory_space<vmem>>, vector<2x32xf32>
    tpu.vector_store %arg18[%c12_95, %c0_96], %437 {strides = array<i32>} : memref<16x32xf32, #tpu.memory_space<vmem>>, vector<2x32xf32>,
    %cst_97 = arith.constant dense<0.000000e+00> : vector<2x128xf32>
    %439 = tpu.matmul %437, %259, %cst_97 {dimension_numbers = #tpu.dot_dimension_numbers<[1], [0], [0], [1], [0, 0, 1, 1], [], []>} : vector<2x32xf32>, vector<32x128xf32>, vector<2x128xf32> -> vector<2x128xf32>
    %440 = vector.extract_strided_slice %269 {offsets = [14, 0], sizes = [2, 64], strides = [1, 1]} : vector<16x64xf32> to vector<2x64xf32>
    %441 = vector.extract_strided_slice %439 {offsets = [0, 0], sizes = [2, 64], strides = [1, 1]} : vector<2x128xf32> to vector<2x64xf32>
    %442 = arith.addf %440, %441 : vector<2x64xf32>
    %443 = arith.negf %442 : vector<2x64xf32>
    %444 = math.exp %443 : vector<2x64xf32>
    %cst_98 = arith.constant 1.000000e+00 : f32
    %445 = vector.broadcast %cst_98 : f32 to vector<2x64xf32>
    %446 = arith.addf %445, %444 : vector<2x64xf32>
    %447 = arith.divf %445, %446 : vector<2x64xf32>
    %448 = vector.extract_strided_slice %447 {offsets = [0, 0], sizes = [2, 32], strides = [1, 1]} : vector<2x64xf32> to vector<2x32xf32>
    %449 = vector.extract_strided_slice %447 {offsets = [0, 32], sizes = [2, 32], strides = [1, 1]} : vector<2x64xf32> to vector<2x32xf32>
    %450 = vector.extract_strided_slice %270 {offsets = [14, 0], sizes = [2, 32], strides = [1, 1]} : vector<16x32xf32> to vector<2x32xf32>
    %451 = vector.extract_strided_slice %439 {offsets = [0, 64], sizes = [2, 32], strides = [1, 1]} : vector<2x128xf32> to vector<2x32xf32>
    %452 = vector.broadcast %260 : vector<1x32xf32> to vector<2x32xf32>
    %453 = arith.addf %451, %452 : vector<2x32xf32>
    %454 = arith.mulf %448, %453 : vector<2x32xf32>
    %455 = arith.addf %450, %454 : vector<2x32xf32>
    %456 = math.tanh %455 : vector<2x32xf32>
    %cst_99 = arith.constant 1.000000e+00 : f32
    %457 = vector.broadcast %cst_99 : f32 to vector<2x32xf32>
    %458 = arith.subf %457, %449 : vector<2x32xf32>
    %459 = arith.mulf %458, %456 : vector<2x32xf32>
    %460 = arith.mulf %449, %437 : vector<2x32xf32>
    %461 = arith.addf %459, %460 : vector<2x32xf32>
    %c14_100 = arith.constant 14 : index
    %c0_101 = arith.constant 0 : index
    %462 = vector.load %arg18[%c14_100, %c0_101] : memref<16x32xf32, #tpu.memory_space<vmem>>, vector<2x32xf32>
    tpu.vector_store %arg18[%c14_100, %c0_101], %461 {strides = array<i32>} : memref<16x32xf32, #tpu.memory_space<vmem>>, vector<2x32xf32>,
    %c0_102 = arith.constant 0 : index
    %c0_103 = arith.constant 0 : index
    %463 = vector.load %arg18[%c0_102, %c0_103] : memref<16x32xf32, #tpu.memory_space<vmem>>, vector<16x32xf32>
    %c0_104 = arith.constant 0 : index
    %c0_105 = arith.constant 0 : index
    %464 = vector.load %arg17[%c0_104, %c0_105] : memref<20x32xf32, #tpu.memory_space<vmem>>, vector<20x32xf32>
    "tpu.trace_start"() <{level = 10 : i32, message = "ih,jh->ij"}> : () -> ()
    %cst_106 = arith.constant dense<0.000000e+00> : vector<16x20xf32>
    %465 = tpu.matmul %463, %464, %cst_106 {dimension_numbers = #tpu.dot_dimension_numbers<[1], [1], [0], [0], [0, 0, 1, 0], [], []>} : vector<16x32xf32>, vector<20x32xf32>, vector<16x20xf32> -> vector<16x20xf32>
    "tpu.trace_stop"() : () -> ()
    %c0_107 = arith.constant 0 : index
    %c0_108 = arith.constant 0 : index
    %466 = vector.load %arg10[%c0_107, %c0_108] : memref<16x20xf32, #tpu.memory_space<vmem>>, vector<16x20xf32>
    %467 = arith.addf %465, %466 : vector<16x20xf32>
    %cst_109 = arith.constant dense<0xFF800000> : vector<16xf32>
    %468 = vector.multi_reduction <maximumf>, %467, %cst_109 [1] : vector<16x20xf32> to vector<16xf32>
    %469 = vector.shape_cast %468 : vector<16xf32> to vector<16x1xf32>
    %470 = vector.broadcast %469 : vector<16x1xf32> to vector<16x20xf32>
    %471 = arith.subf %467, %470 : vector<16x20xf32>
    %472 = math.exp %471 : vector<16x20xf32>
    %cst_110 = arith.constant dense<0.000000e+00> : vector<16xf32>
    %473 = vector.multi_reduction <add>, %472, %cst_110 [1] : vector<16x20xf32> to vector<16xf32>
    %474 = vector.shape_cast %473 : vector<16xf32> to vector<16x1xf32>
    %475 = vector.broadcast %474 : vector<16x1xf32> to vector<16x20xf32>
    %476 = arith.divf %472, %475 : vector<16x20xf32>
    %cst_111 = arith.constant dense<0.000000e+00> : vector<16x32xf32>
    %477 = tpu.matmul %476, %464, %cst_111 {dimension_numbers = #tpu.dot_dimension_numbers<[1], [0], [0], [1], [0, 0, 1, 1], [], []>} : vector<16x20xf32>, vector<20x32xf32>, vector<16x32xf32> -> vector<16x32xf32>
    %c0_112 = arith.constant 0 : index
    %c0_113 = arith.constant 0 : index
    %478 = vector.load %arg11[%c0_112, %c0_113] : memref<32x32xf32, #tpu.memory_space<vmem>>, vector<32x32xf32>
    %cst_114 = arith.constant dense<0.000000e+00> : vector<16x32xf32>
    %479 = tpu.matmul %463, %478, %cst_114 {dimension_numbers = #tpu.dot_dimension_numbers<[1], [0], [0], [1], [0, 0, 1, 1], [], []>} : vector<16x32xf32>, vector<32x32xf32>, vector<16x32xf32> -> vector<16x32xf32>
    %c0_115 = arith.constant 0 : index
    %c0_116 = arith.constant 0 : index
    %480 = vector.load %arg12[%c0_115, %c0_116] : memref<32x32xf32, #tpu.memory_space<vmem>>, vector<32x32xf32>
    %cst_117 = arith.constant dense<0.000000e+00> : vector<16x32xf32>
    %481 = tpu.matmul %477, %480, %cst_117 {dimension_numbers = #tpu.dot_dimension_numbers<[1], [0], [0], [1], [0, 0, 1, 1], [], []>} : vector<16x32xf32>, vector<32x32xf32>, vector<16x32xf32> -> vector<16x32xf32>
    %482 = arith.addf %479, %481 : vector<16x32xf32>
    %c0_118 = arith.constant 0 : index
    %c0_119 = arith.constant 0 : index
    %483 = vector.load %arg13[%c0_118, %c0_119] : memref<1x32xf32, #tpu.memory_space<vmem>>, vector<1x32xf32>
    %484 = vector.broadcast %483 : vector<1x32xf32> to vector<16x32xf32>
    %485 = arith.addf %482, %484 : vector<16x32xf32>
    %486 = math.tanh %485 : vector<16x32xf32>
    %c0_120 = arith.constant 0 : index
    %c0_121 = arith.constant 0 : index
    %487 = vector.load %arg14[%c0_120, %c0_121] : memref<32x128xf32, #tpu.memory_space<vmem>>, vector<32x128xf32>
    %cst_122 = arith.constant dense<0.000000e+00> : vector<16x128xf32>
    %488 = tpu.matmul %486, %487, %cst_122 {dimension_numbers = #tpu.dot_dimension_numbers<[1], [0], [0], [1], [0, 0, 1, 1], [], []>} : vector<16x32xf32>, vector<32x128xf32>, vector<16x128xf32> -> vector<16x128xf32>
    %c0_123 = arith.constant 0 : index
    %c0_124 = arith.constant 0 : index
    %489 = vector.load %arg15[%c0_123, %c0_124] : memref<1x128xf32, #tpu.memory_space<vmem>>, vector<1x128xf32>
    %490 = vector.broadcast %489 : vector<1x128xf32> to vector<16x128xf32>
    %491 = arith.addf %488, %490 : vector<16x128xf32>
    %c0_125 = arith.constant 0 : index
    %c0_126 = arith.constant 0 : index
    %492 = vector.load %arg16[%c0_125, %c0_126] : memref<16x128xf32, #tpu.memory_space<vmem>>, vector<16x128xf32>
    tpu.vector_store %arg16[%c0_125, %c0_126], %491 {strides = array<i32>} : memref<16x128xf32, #tpu.memory_space<vmem>>, vector<16x128xf32>,
    return
  }
}

</mosaic_0001>

<bundles_post_ra>
// kernel: seq2seq_forward.1
= control target key start
LH: loop header
LB: loop body
LE: loop exit
PB: predicated region body
PF: predicated region fallthrough
CT: control target
= control target key end

     0   :  { %s4299_s0 = inlined_call_operand.vmem [shape: s32[20,1], index: 0, kind: input, shape index: {}]   ;;  %s4300_s1 = inlined_call_operand.vmem [shape: s32[16,1], index: 1, kind: input, shape index: {}]   ;;  %s4301_s2 = inlined_call_operand.vmem [shape: f32[128,128], index: 2, kind: input, shape index: {}]   ;;  %s4302_s3 = inlined_call_operand.vmem [shape: f32[1,128], index: 3, kind: input, shape index: {}]   ;;  %s4303_s4 = inlined_call_operand.vmem [shape: f32[32,128], index: 4, kind: input, shape index: {}]   ;;  %s4304_s5 = inlined_call_operand.vmem [shape: f32[1,32], index: 5, kind: input, shape index: {}]   ;;  %s4305_s6 = inlined_call_operand.vmem [shape: f32[128,128], index: 6, kind: input, shape index: {}]   ;;  %s4306_s7 = inlined_call_operand.vmem [shape: f32[1,128], index: 7, kind: input, shape index: {}]   ;;  %s4307_s8 = inlined_call_operand.vmem [shape: f32[32,128], index: 8, kind: input, shape index: {}]   ;;  %s4308_s9 = inlined_call_operand.vmem [shape: f32[1,32], index: 9, kind: input, shape index: {}]   ;;  %s4309_s10 = inlined_call_operand.vmem [shape: f32[16,20], index: 10, kind: input, shape index: {}]   ;;  %s4310_s11 = inlined_call_operand.vmem [shape: f32[32,32], index: 11, kind: input, shape index: {}]   ;;  %s4311_s12 = inlined_call_operand.vmem [shape: f32[32,32], index: 12, kind: input, shape index: {}]   ;;  %s4312_s13 = inlined_call_operand.vmem [shape: f32[1,32], index: 13, kind: input, shape index: {}]   ;;  %s4313_s14 = inlined_call_operand.vmem [shape: f32[32,128], index: 14, kind: input, shape index: {}]   ;;  %s4314_s15 = inlined_call_operand.vmem [shape: f32[1,128], index: 15, kind: input, shape index: {}]   ;;  %s4315_s16 = inlined_call_operand.hbm [shape: f32[16,128], index: 16, kind: output, shape index: {}]  }
   0x1   :  { %4317 = sst [smem:[#allocation7_spill]] %s4299_s0 }
   0x2   :  { %s4318_s23 = sld [smem:[#allocation7_spill]]  ;;  %v3601_v1 = vld [vmem:[%s4303_s4 + $0x18] sm:$0xff]  ;;  %v3501_v2 = vmov 0   ;;  %v3502_v3 = vmov 0.0   ;;  %v3607_v4 = vld [vmem:[%s4303_s4 + $0x10] sm:$0xff]  ;;  %v3617_v6 = vld [vmem:[%s4303_s4 + $0x8] sm:$0xff] }
   0x3   :  { %3357 = vset.pattern.permute.xlu0 %v3501_v2  ;;  %3064 = vmatprep.subr.mxu1 %v3502_v3  ;;  %v72_v5 = vld [vmem:[%s4301_s2 + $0x78] sm:$0xff]  ;;  %vm3503_vm0 = vmmov 0   ;;  %v71_v7 = vld [vmem:[%s4301_s2 + $0x70] sm:$0xff]  ;;  %v3630_v8 = vld [vmem:[%s4303_s4] sm:$0xff] }
   0x4   :  { %3065 = vmatpush3.msra.mxu1 %v3601_v1  ;;  %3072 = vmatprep.mubr.msk.f32.mxu1 %vm3503_vm0, %v3502_v3  ;;  %v70_v9 = vld [vmem:[%s4301_s2 + $0x68] sm:$0xff]  ;;  %v2811_v10 = vld [vmem:[%s4304_s5] ss:$0 sm:$0xff] }
   0x5   :  { %3066 = vmatprep.subr.mxu1 %v3502_v3  ;;  %3023 = vmatprep.subr.mxu0 %v3502_v3 }
   0x6   :  { %3067 = vmatpush3.msra.mxu1 %v3607_v4  ;;  %3024 = vmatpush3.msra.mxu0 %v72_v5 }
   0x7   :  { %3068 = vmatprep.subr.mxu1 %v3502_v3  ;;  %3025 = vmatprep.subr.mxu0 %v3502_v3 }
   0x8   :  { %v54_v0 = vld [vmem:[%s4318_s23] sm:$0xff]  ;;  %3069 = vmatpush3.msra.mxu1 %v3617_v6  ;;  %3026 = vmatpush3.msra.mxu0 %v71_v7 }
   0x9   :  { %82 = vperm.xlu0 %3357, %v54_v0   ;;  %3070 = vmatprep.subr.mxu1 %v3502_v3 }
   0xa   :  { %21 = vsyncpa [#allocation5], 0  ;;  %3071 = vmatpush3.msra.mxu1 %v3630_v8  ;;  %3027 = vmatprep.subr.mxu0 %v3502_v3  ;;  %v69_v11 = vld [vmem:[%s4301_s2 + $0x60] sm:$0xff]  ;;  %v68_v12 = vld [vmem:[%s4301_s2 + $0x58] sm:$0xff]  ;;  %s3504_s29 = smov 64   ;;  %v79_v24 = vlaneseq  ;;  %v3505_v27 = vmov 1.0  }
   0xb   :  { %3073 = vmatmul.mubr.f32.vlgmr.msra.gmra.mxu1 %v3502_v3  ;;  %3028 = vmatpush3.msra.mxu0 %v70_v9  ;;  %v67_v13 = vld [vmem:[%s4301_s2 + $0x50] sm:$0xff]  ;;  %v66_v14 = vld [vmem:[%s4301_s2 + $0x48] sm:$0xff]  ;;  %v65_v15 = vld [vmem:[%s4301_s2 + $0x40] sm:$0xff]  ;;  %vm298_vm2 = vcmask 254976   ;;  %vm185_vm3 = vcmask 261120   ;;  %vm409_vm8 = vcmask 257026  }
   0xc   :  { %3029 = vmatprep.subr.mxu0 %v3502_v3  ;;  %3055 = vmatprep.mubr.msk.f32.mxu0 %vm3503_vm0, %v3502_v3  ;;  %v64_v16 = vld [vmem:[%s4301_s2 + $0x38] sm:$0xff]  ;;  %v63_v17 = vld [vmem:[%s4301_s2 + $0x30] sm:$0xff]  ;;  %v62_v18 = vld [vmem:[%s4301_s2 + $0x28] sm:$0xff]  ;;  %v3711_v25 = vand.u32 127, %v79_v24  ;;  %vm523_vm9 = vcmask 259076   ;;  %vm2440_vm10 = vcmask 1043456  }
   0xd   :  { %271 = vrot.lane.b32.xlu0 %v2811_v10, %s3504_s29  ;;  %3030 = vmatpush3.msra.mxu0 %v69_v11  ;;  %v61_v19 = vld [vmem:[%s4301_s2 + $0x20] sm:$0xff]  ;;  %v60_v20 = vld [vmem:[%s4301_s2 + $0x18] sm:$0xff]  ;;  %v59_v21 = vld [vmem:[%s4301_s2 + $0x10] sm:$0xff]  ;;  %vm637_vm11 = vcmask 261126   ;;  %vm2411_vm12 = vcmask 162816   ;;  %s3507_s20 = smov [#allocation4]  }
   0xe   :  { %3031 = vmatprep.subr.mxu0 %v3502_v3  ;;  %3075 = vmatprep.subr.mxu1 %v3502_v3  ;;  %v58_v22 = vld [vmem:[%s4301_s2 + $0x8] sm:$0xff]  ;;  %v57_v23 = vld [vmem:[%s4301_s2] sm:$0xff] }
   0xf   :  { %3032 = vmatpush3.msra.mxu0 %v68_v12  ;;  %3076 = vmatpush3.msra.mxu1 %v3601_v1  ;;  %v3732_v32 = vld [vmem:[%s4302_s3] ss:$0 sm:$0xff]  ;;  %s3506_s3 = smov 96  }
  0x10   :  { %3033 = vmatprep.subr.mxu0 %v3502_v3  ;;  %3077 = vmatprep.subr.mxu1 %v3502_v3 }
  0x11   :  { %3034 = vmatpush3.msra.mxu0 %v67_v13  ;;  %3078 = vmatpush3.msra.mxu1 %v3607_v4 }
  0x12   :  { %3035 = vmatprep.subr.mxu0 %v3502_v3  ;;  %3079 = vmatprep.subr.mxu1 %v3502_v3 }
  0x13   :  { %3036 = vmatpush3.msra.mxu0 %v66_v14  ;;  %3080 = vmatpush3.msra.mxu1 %v3617_v6 }
  0x14   :  { %3037 = vmatprep.subr.mxu0 %v3502_v3  ;;  %3081 = vmatprep.subr.mxu1 %v3502_v3 }
  0x15   :  { %3038 = vmatpush3.msra.mxu0 %v65_v15  ;;  %3082 = vmatpush3.msra.mxu1 %v3630_v8 }
  0x16   :  { %3039 = vmatprep.subr.mxu0 %v3502_v3  ;;  %3083 = vmatprep.mubr.msk.f32.mxu1 %vm3503_vm0, %v3502_v3 }
  0x17   :  { %3040 = vmatpush3.msra.mxu0 %v64_v16  ;;  %3086 = vmatprep.subr.mxu1 %v3502_v3 }
  0x18   :  { %3041 = vmatprep.subr.mxu0 %v3502_v3  ;;  %3358 = vset.pattern.permute.xlu1 %v3501_v2 }
  0x19   :  { %3042 = vmatpush3.msra.mxu0 %v63_v17 }
  0x1a   :  { %3043 = vmatprep.subr.mxu0 %v3502_v3 }
  0x1b   :  { %3044 = vmatpush3.msra.mxu0 %v62_v18 }
  0x1c   :  { %3045 = vmatprep.subr.mxu0 %v3502_v3 }
  0x1d   :  { %3046 = vmatpush3.msra.mxu0 %v61_v19 }
  0x1e   :  { %3047 = vmatprep.subr.mxu0 %v3502_v3 }
  0x1f   :  { %3048 = vmatpush3.msra.mxu0 %v60_v20 }
  0x20   :  { %3049 = vmatprep.subr.mxu0 %v3502_v3 }
  0x21   :  { %3050 = vmatpush3.msra.mxu0 %v59_v21 }
  0x22   :  { %3051 = vmatprep.subr.mxu0 %v3502_v3 }
  0x23   :  { %3052 = vmatpush3.msra.mxu0 %v58_v22 }
  0x24   :  { %3053 = vmatprep.subr.mxu0 %v3502_v3 }
  0x25   :  { %3054 = vmatpush3.msra.mxu0 %v57_v23 }
  0x26   :  { %3119 = vmatprep.subr.mxu0 %v3502_v3 }
  0x84   :  { %v83_v26 = vpop.permute.xlu0 %82 }
  0x85   :  { %vm90_vm1 = vcmp.eq.s32.totalorder %v83_v26, %v3711_v25 }
  0x86   :  { %3056 = vmatmul.mubr.msk.f32.vlgmr.msra.gmra.mxu0 %vm90_vm1, %v3505_v27 }
  0x87   :  { %3058 = vmatprep.mubr.msk.f32.mxu0 %vm3503_vm0, %v3502_v3  ;;  %3120 = vmatpush3.msra.mxu0 %v3601_v1 }
  0x88   :  { %3121 = vmatprep.subr.mxu0 %v3502_v3  ;;  %v3725_v28 = vpop.permute.xlu0 %271 }
  0x89   :  { %3122 = vmatpush3.msra.mxu0 %v3607_v4 }
  0x8a   :  { %3123 = vmatprep.subr.mxu0 %v3502_v3 }
  0x8b   :  { %3124 = vmatpush3.msra.mxu0 %v3617_v6 }
  0x8c   :  { %3125 = vmatprep.subr.mxu0 %v3502_v3 }
  0x8d   :  { %3126 = vmatpush3.msra.mxu0 %v3630_v8 }
  0x8e   :  { %3141 = vmatprep.subr.mxu0 %v3502_v3 }
  0xcb   :  { %v255_v29 = vpop.f32.mrf.mxu1 }
  0xcc   :  { %v274_v30 = vadd.f32 %v3725_v28, %v255_v29 }
  0xcd   :  { %v3074_v31 = vpop.f32.mrf.mxu1 }
  0xce   :  { %276 = vrot.lane.b32.xlu1 %v274_v30, %s3504_s29 }
 0x140   :  { %v277_v40 = vpop.permute.xlu1 %276 }
 0x146   :  { %v171_v33 = vpop.f32.mrf.mxu0 }
 0x147   :  { %v3735_v34 = vadd.f32 %v3732_v32, %v171_v33 }
 0x148   :  { %v3057_v35 = vpop.f32.mrf.mxu0 }
 0x149   :  { %v259_v36 = vadd.f32 %v255_v29, %v3735_v34 }
 0x14b   :  { %v2810_v37 = vmul.f32 -1.442695, %v259_v36 }
 0x14d   :  { %3359 = vpow2.f32 %v2810_v37 }
 0x15a   :  { %v3360_v38 = vpop.eup %3359 }
 0x15b   :  { %v263_v39 = vadd.f32 1.0, %v3360_v38 }
 0x15d   :  { %3361 = vrcp.f32 %v263_v39 }
 0x16a   :  { %v3362_v41 = vpop.eup %3361 }
 0x16b   :  { %v279_v42 = vmul.f32 %v3362_v41, %v277_v40  ;;  %v286_v46 = vsub.f32 1.0, %v3362_v41  ;;  %v292_v48 = vmul.f32 0.0, %v3362_v41 }
 0x16d   :  { %281 = vrot.lane.b32.xlu1 %v279_v42, %s3504_s29 }
 0x1df   :  { %v282_v43 = vpop.permute.xlu1 %281 }
 0x1e0   :  { %v284_v44 = vadd.f32 %v282_v43, %v3735_v34 }
 0x1e2   :  { %3363 = vtanh.f32 %v284_v44 }
 0x1ef   :  { %v3364_v45 = vpop.eup %3363 }
 0x1f0   :  { %288 = vrot.lane.b32.xlu0 %v3364_v45, %s3506_s3 }
 0x262   :  { %v289_v47 = vpop.permute.xlu0 %288 }
 0x263   :  { %v291_v49 = vmul.f32 %v289_v47, %v286_v46 }
 0x265   :  { %v293_v50 = vadd.f32 %v292_v48, %v291_v49 }
 0x267   :  { %295 = vrot.lane.b32.xlu1 %v293_v50, %s3506_s3  ;;  %v401_v7 = vrot.slane %v293_v50, 6 }
 0x2d9   :  { %v296_v51 = vpop.permute.xlu1 %295 }
 0x2da   :  { %299 = vst.msk [vmem:[#allocation2] sm:$0x3] %vm298_vm2, %v296_v51  ;;  %3084 = vmatmul.mubr.msk.f32.vlgmr.msra.gmra.mxu1 %vm185_vm3, %v296_v51 }
 0x2db   :  { %3087 = vmatpush3.msra.mxu1 %v3601_v1  ;;  %3094 = vmatprep.mubr.msk.f32.mxu1 %vm3503_vm0, %v3502_v3 }
 0x2dc   :  { %3088 = vmatprep.subr.mxu1 %v3502_v3 }
 0x2dd   :  { %3089 = vmatpush3.msra.mxu1 %v3607_v4 }
 0x2de   :  { %3090 = vmatprep.subr.mxu1 %v3502_v3 }
 0x2df   :  { %3091 = vmatpush3.msra.mxu1 %v3617_v6 }
 0x2e0   :  { %3092 = vmatprep.subr.mxu1 %v3502_v3 }
 0x2e1   :  { %3093 = vmatpush3.msra.mxu1 %v3630_v8 }
 0x2e2   :  { %3097 = vmatprep.subr.mxu1 %v3502_v3 }
 0x39a   :  { %v368_v52 = vpop.f32.mrf.mxu1 }
 0x39b   :  { %v382_v53 = vadd.f32 %v368_v52, %v3725_v28  ;;  %v373_v56 = vrot.slane %v368_v52, 6 }
 0x39c   :  { %v3085_v54 = vpop.f32.mrf.mxu1 }
 0x39d   :  { %v384_v55 = vrot.slane %v382_v53, 6  ;;  %v375_v57 = vadd.f32 %v373_v56, %v3735_v34 }
 0x39f   :  { %385 = vrot.lane.b32.xlu0 %v384_v55, %s3504_s29  ;;  %v2813_v58 = vmul.f32 -1.442695, %v375_v57 }
 0x3a1   :  { %3365 = vpow2.f32 %v2813_v58 }
 0x3ae   :  { %v3366_v59 = vpop.eup %3365 }
 0x3af   :  { %v379_v60 = vadd.f32 1.0, %v3366_v59  ;;  %v55_v59 = vld [vmem:[%s4318_s23 + $0x8] sm:$0xff] }
 0x3b1   :  { %3367 = vrcp.f32 %v379_v60 }
 0x3be   :  { %v3368_v61 = vpop.eup %3367 }
 0x3bf   :  { %v395_v9 = vsub.f32 1.0, %v3368_v61  ;;  %v403_v12 = vmul.f32 %v3368_v61, %v401_v7 }
 0x411   :  { %v386_v62 = vpop.permute.xlu0 %385 }
 0x412   :  { %v388_v63 = vmul.f32 %v3368_v61, %v386_v62 }
 0x414   :  { %390 = vrot.lane.b32.xlu1 %v388_v63, %s3504_s29 }
 0x486   :  { %v391_v0 = vpop.permute.xlu1 %390 }
 0x487   :  { %v393_v2 = vadd.f32 %v391_v0, %v3735_v34 }
 0x489   :  { %3369 = vtanh.f32 %v393_v2 }
 0x496   :  { %v3370_v5 = vpop.eup %3369 }
 0x497   :  { %397 = vrot.lane.b32.xlu0 %v3370_v5, %s3506_s3 }
 0x509   :  { %v398_v10 = vpop.permute.xlu0 %397 }
 0x50a   :  { %v400_v11 = vmul.f32 %v398_v10, %v395_v9 }
 0x50c   :  { %v3760_v13 = vadd.f32 %v403_v12, %v400_v11 }
 0x50e   :  { %v411_v14 = vrot.slane %v3760_v13, 2  ;;  %v515_v37 = vrot.slane %v3760_v13, 6 }
 0x510   :  { %412 = vrot.lane.b32.xlu1 %v411_v14, %s3506_s3 }
 0x582   :  { %v413_v15 = vpop.permute.xlu1 %412 }
 0x583   :  { %3095 = vmatmul.mubr.msk.f32.vlgmr.msra.gmra.mxu1 %vm185_vm3, %v413_v15 }
 0x584   :  { %3098 = vmatpush3.msra.mxu1 %v3601_v1  ;;  %3105 = vmatprep.mubr.msk.f32.mxu1 %vm3503_vm0, %v3502_v3 }
 0x585   :  { %3099 = vmatprep.subr.mxu1 %v3502_v3 }
 0x586   :  { %3100 = vmatpush3.msra.mxu1 %v3607_v4 }
 0x587   :  { %3101 = vmatprep.subr.mxu1 %v3502_v3 }
 0x588   :  { %3102 = vmatpush3.msra.mxu1 %v3617_v6 }
 0x589   :  { %3103 = vmatprep.subr.mxu1 %v3502_v3 }
 0x58a   :  { %3104 = vmatpush3.msra.mxu1 %v3630_v8 }
 0x58b   :  { %3108 = vmatprep.subr.mxu1 %v3502_v3 }
 0x643   :  { %v482_v16 = vpop.f32.mrf.mxu1 }
 0x644   :  { %v496_v17 = vadd.f32 %v482_v16, %v3725_v28  ;;  %v487_v20 = vrot.slane %v482_v16, 4 }
 0x645   :  { %v3096_v18 = vpop.f32.mrf.mxu1 }
 0x646   :  { %v498_v19 = vrot.slane %v496_v17, 4  ;;  %v489_v21 = vadd.f32 %v487_v20, %v3735_v34 }
 0x648   :  { %499 = vrot.lane.b32.xlu0 %v498_v19, %s3504_s29  ;;  %v2815_v22 = vmul.f32 -1.442695, %v489_v21 }
 0x64a   :  { %3371 = vpow2.f32 %v2815_v22 }
 0x657   :  { %v3372_v23 = vpop.eup %3371 }
 0x658   :  { %v493_v24 = vadd.f32 1.0, %v3372_v23  ;;  %v56_v23 = vld [vmem:[%s4318_s23 + $0x10] sm:$0xf] }
 0x65a   :  { %3373 = vrcp.f32 %v493_v24 }
 0x667   :  { %v3374_v26 = vpop.eup %3373 }
 0x668   :  { %v509_v36 = vsub.f32 1.0, %v3374_v26  ;;  %v517_v39 = vmul.f32 %v3374_v26, %v515_v37 }
 0x6ba   :  { %v500_v29 = vpop.permute.xlu0 %499 }
 0x6bb   :  { %v502_v30 = vmul.f32 %v3374_v26, %v500_v29 }
 0x6bd   :  { %504 = vrot.lane.b32.xlu1 %v502_v30, %s3504_s29 }
 0x72f   :  { %v505_v31 = vpop.permute.xlu1 %504 }
 0x730   :  { %v507_v33 = vadd.f32 %v505_v31, %v3735_v34 }
 0x732   :  { %3375 = vtanh.f32 %v507_v33 }
 0x73f   :  { %v3376_v35 = vpop.eup %3375 }
 0x740   :  { %511 = vrot.lane.b32.xlu0 %v3376_v35, %s3506_s3 }
 0x7b2   :  { %v512_v38 = vpop.permute.xlu0 %511 }
 0x7b3   :  { %v514_v40 = vmul.f32 %v512_v38, %v509_v36 }
 0x7b5   :  { %v3782_v41 = vadd.f32 %v517_v39, %v514_v40 }
 0x7b7   :  { %v525_v42 = vrot.slane %v3782_v41, 4  ;;  %v629_v61 = vrot.slane %v3782_v41, 6 }
 0x7b9   :  { %526 = vrot.lane.b32.xlu1 %v525_v42, %s3506_s3 }
 0x82b   :  { %v527_v43 = vpop.permute.xlu1 %526 }
 0x82c   :  { %3106 = vmatmul.mubr.msk.f32.vlgmr.msra.gmra.mxu1 %vm185_vm3, %v527_v43 }
 0x82d   :  { %3109 = vmatpush3.msra.mxu1 %v3601_v1  ;;  %3116 = vmatprep.mubr.msk.f32.mxu1 %vm3503_vm0, %v3502_v3 }
 0x82e   :  { %3110 = vmatprep.subr.mxu1 %v3502_v3 }
 0x82f   :  { %3111 = vmatpush3.msra.mxu1 %v3607_v4 }
 0x830   :  { %3112 = vmatprep.subr.mxu1 %v3502_v3 }
 0x831   :  { %3113 = vmatpush3.msra.mxu1 %v3617_v6 }
 0x832   :  { %3114 = vmatprep.subr.mxu1 %v3502_v3 }
 0x833   :  { %3115 = vmatpush3.msra.mxu1 %v3630_v8 }
 0x834   :  { %3130 = vmatprep.subr.mxu1 %v3502_v3 }
 0x8ec   :  { %v596_v44 = vpop.f32.mrf.mxu1 }
 0x8ed   :  { %v610_v45 = vadd.f32 %v596_v44, %v3725_v28  ;;  %v601_v48 = vrot.slane %v596_v44, 2 }
 0x8ee   :  { %v3107_v46 = vpop.f32.mrf.mxu1 }
 0x8ef   :  { %v612_v47 = vrot.slane %v610_v45, 2  ;;  %v603_v49 = vadd.f32 %v601_v48, %v3735_v34 }
 0x8f1   :  { %613 = vrot.lane.b32.xlu0 %v612_v47, %s3504_s29  ;;  %v2817_v50 = vmul.f32 -1.442695, %v603_v49 }
 0x8f3   :  { %3377 = vpow2.f32 %v2817_v50 }
 0x900   :  { %v3378_v51 = vpop.eup %3377 }
 0x901   :  { %v607_v52 = vadd.f32 1.0, %v3378_v51 }
 0x903   :  { %3379 = vrcp.f32 %v607_v52 }
 0x910   :  { %v3380_v53 = vpop.eup %3379 }
 0x911   :  { %v623_v60 = vsub.f32 1.0, %v3380_v53  ;;  %v631_v63 = vmul.f32 %v3380_v53, %v629_v61 }
 0x963   :  { %v614_v54 = vpop.permute.xlu0 %613 }
 0x964   :  { %v616_v55 = vmul.f32 %v3380_v53, %v614_v54 }
 0x966   :  { %618 = vrot.lane.b32.xlu1 %v616_v55, %s3504_s29 }
 0x9d8   :  { %v619_v56 = vpop.permute.xlu1 %618 }
 0x9d9   :  { %v621_v57 = vadd.f32 %v619_v56, %v3735_v34 }
 0x9db   :  { %3381 = vtanh.f32 %v621_v57 }
 0x9e8   :  { %v3382_v58 = vpop.eup %3381 }
 0x9e9   :  { %625 = vrot.lane.b32.xlu0 %v3382_v58, %s3506_s3 }
 0x9ed   :  { %85 = vperm.xlu0 %3357, %v55_v59  }
 0xa5b   :  { %v626_v62 = vpop.permute.xlu0 %625 }
 0xa5c   :  { %v628_v0 = vmul.f32 %v626_v62, %v623_v60 }
 0xa5e   :  { %v3807_v2 = vadd.f32 %v631_v63, %v628_v0 }
 0xa60   :  { %v639_v5 = vrot.slane %v3807_v2, 6 }
 0xa62   :  { %640 = vrot.lane.b32.xlu1 %v639_v5, %s3506_s3 }
 0xa68   :  { %v86_v34 = vpop.permute.xlu0 %85 }
 0xa69   :  { %vm91_vm4 = vcmp.eq.s32.totalorder %v86_v34, %v3711_v25 }
 0xa6a   :  { %3059 = vmatmul.mubr.msk.f32.gmra.mxu0 %vm91_vm4, %v3505_v27 }
 0xa6b   :  { %3061 = vmatprep.mubr.msk.f32.mxu0 %vm3503_vm0, %v3502_v3 }
 0xad4   :  { %v641_v7 = vpop.permute.xlu1 %640 }
 0xad5   :  { %3117 = vmatmul.mubr.msk.f32.vlgmr.msra.gmra.mxu1 %vm185_vm3, %v641_v7 }
 0xad6   :  { %3131 = vmatpush3.msra.mxu1 %v3601_v1  ;;  %3138 = vmatprep.mubr.msk.f32.mxu1 %vm3503_vm0, %v3502_v3 }
 0xad7   :  { %3132 = vmatprep.subr.mxu1 %v3502_v3 }
 0xad8   :  { %3133 = vmatpush3.msra.mxu1 %v3607_v4 }
 0xad9   :  { %3134 = vmatprep.subr.mxu1 %v3502_v3 }
 0xada   :  { %3135 = vmatpush3.msra.mxu1 %v3617_v6 }
 0xadb   :  { %3136 = vmatprep.subr.mxu1 %v3502_v3 }
 0xadc   :  { %3137 = vmatpush3.msra.mxu1 %v3630_v8 }
 0xadd   :  { %3152 = vmatprep.subr.mxu1 %v3502_v3 }
 0xb2a   :  { %v176_v9 = vpop.f32.mrf.mxu0 }
 0xb2b   :  { %v3829_v15 = vadd.f32 %v3732_v32, %v176_v9 }
 0xb2c   :  { %v3060_v10 = vpop.f32.mrf.mxu0 }
 0xb95   :  { %v710_v11 = vpop.f32.mrf.mxu1 }
 0xb96   :  { %v721_v12 = vadd.f32 %v710_v11, %v3725_v28  ;;  %v714_v16 = vadd.f32 %v710_v11, %v3829_v15 }
 0xb97   :  { %v3118_v14 = vpop.f32.mrf.mxu1 }
 0xb98   :  { %723 = vrot.lane.b32.xlu1 %v721_v12, %s3504_s29  ;;  %v2819_v17 = vmul.f32 -1.442695, %v714_v16 }
 0xb9a   :  { %3383 = vpow2.f32 %v2819_v17 }
 0xba7   :  { %v3384_v18 = vpop.eup %3383 }
 0xba8   :  { %v718_v19 = vadd.f32 1.0, %v3384_v18 }
 0xbaa   :  { %3385 = vrcp.f32 %v718_v19 }
 0xbb7   :  { %v3386_v20 = vpop.eup %3385 }
 0xbb8   :  { %v733_v31 = vsub.f32 1.0, %v3386_v20  ;;  %v740_v35 = vmul.f32 %v3386_v20, %v639_v5 }
 0xc0a   :  { %v724_v21 = vpop.permute.xlu1 %723 }
 0xc0b   :  { %v726_v22 = vmul.f32 %v3386_v20, %v724_v21 }
 0xc0d   :  { %728 = vrot.lane.b32.xlu0 %v726_v22, %s3504_s29 }
 0xc11   :  { %88 = vperm.xlu0 %3357, %v56_v23  }
 0xc7f   :  { %v729_v24 = vpop.permute.xlu0 %728 }
 0xc80   :  { %v731_v26 = vadd.f32 %v729_v24, %v3829_v15 }
 0xc82   :  { %3387 = vtanh.f32 %v731_v26 }
 0xc8c   :  { %v89_v29 = vpop.permute.xlu0 %88 }
 0xc8d   :  { %vm92_vm5 = vcmp.eq.s32.totalorder %v89_v29, %v3711_v25 }
 0xc8e   :  { %3062 = vmatmul.mubr.msk.f32.gmra.mxu0 %vm92_vm5, %v3505_v27 }
 0xc8f   :  { %v3388_v30 = vpop.eup %3387  ;;  %3127 = vmatprep.mubr.msk.f32.mxu0 %vm3503_vm0, %v3502_v3 }
 0xc90   :  { %735 = vrot.lane.b32.xlu1 %v3388_v30, %s3506_s3 }
 0xd02   :  { %v736_v33 = vpop.permute.xlu1 %735 }
 0xd03   :  { %v738_v36 = vmul.f32 %v736_v33, %v733_v31 }
 0xd05   :  { %v741_v37 = vadd.f32 %v740_v35, %v738_v36 }
 0xd07   :  { %743 = vrot.lane.b32.xlu1 %v741_v37, %s3506_s3  ;;  %v848_v57 = vrot.slane %v741_v37, 6 }
 0xd4e   :  { %v3843_v38 = vpop.f32.mrf.mxu0 }
 0xd50   :  { %v3063_v39 = vpop.f32.mrf.mxu0 }
 0xd79   :  { %v744_v40 = vpop.permute.xlu1 %743 }
 0xd7a   :  { %746 = vst.msk [vmem:[#allocation2 + $0x8] sm:$0x3] %vm298_vm2, %v744_v40  ;;  %3128 = vmatmul.mubr.msk.f32.vlgmr.msra.gmra.mxu0 %vm185_vm3, %v744_v40 }
 0xd7b   :  { %3142 = vmatpush3.msra.mxu0 %v3601_v1  ;;  %3149 = vmatprep.mubr.msk.f32.mxu0 %vm3503_vm0, %v3502_v3 }
 0xd7c   :  { %3143 = vmatprep.subr.mxu0 %v3502_v3 }
 0xd7d   :  { %3144 = vmatpush3.msra.mxu0 %v3607_v4 }
 0xd7e   :  { %3145 = vmatprep.subr.mxu0 %v3502_v3 }
 0xd7f   :  { %3146 = vmatpush3.msra.mxu0 %v3617_v6 }
 0xd80   :  { %3147 = vmatprep.subr.mxu0 %v3502_v3 }
 0xd81   :  { %3148 = vmatpush3.msra.mxu0 %v3630_v8 }
 0xd82   :  { %3163 = vmatprep.subr.mxu0 %v3502_v3 }
 0xe3a   :  { %v815_v42 = vpop.f32.mrf.mxu0 }
 0xe3b   :  { %v829_v43 = vadd.f32 %v815_v42, %v3725_v28  ;;  %v820_v46 = vrot.slane %v815_v42, 6 }
 0xe3c   :  { %v3129_v44 = vpop.f32.mrf.mxu0 }
 0xe3d   :  { %v831_v45 = vrot.slane %v829_v43, 6  ;;  %v822_v47 = vadd.f32 %v820_v46, %v3829_v15 }
 0xe3f   :  { %832 = vrot.lane.b32.xlu0 %v831_v45, %s3504_s29  ;;  %v2821_v48 = vmul.f32 -1.442695, %v822_v47 }
 0xe41   :  { %3389 = vpow2.f32 %v2821_v48 }
 0xe4e   :  { %v3390_v49 = vpop.eup %3389 }
 0xe4f   :  { %v826_v50 = vadd.f32 1.0, %v3390_v49 }
 0xe51   :  { %3391 = vrcp.f32 %v826_v50 }
 0xe5e   :  { %v3392_v51 = vpop.eup %3391 }
 0xe5f   :  { %v842_v58 = vsub.f32 1.0, %v3392_v51  ;;  %v850_v60 = vmul.f32 %v3392_v51, %v848_v57 }
 0xeb1   :  { %v833_v52 = vpop.permute.xlu0 %832 }
 0xeb2   :  { %v835_v53 = vmul.f32 %v3392_v51, %v833_v52 }
 0xeb4   :  { %837 = vrot.lane.b32.xlu1 %v835_v53, %s3504_s29 }
 0xf26   :  { %v838_v54 = vpop.permute.xlu1 %837 }
 0xf27   :  { %v840_v55 = vadd.f32 %v838_v54, %v3829_v15 }
 0xf29   :  { %3393 = vtanh.f32 %v840_v55 }
 0xf36   :  { %v3394_v56 = vpop.eup %3393 }
 0xf37   :  { %844 = vrot.lane.b32.xlu0 %v3394_v56, %s3506_s3 }
 0xfa9   :  { %v845_v59 = vpop.permute.xlu0 %844 }
 0xfaa   :  { %v847_v61 = vmul.f32 %v845_v59, %v842_v58  ;;  %v182_v59 = vadd.f32 %v3732_v32, %v3843_v38 }
 0xfac   :  { %v3863_v62 = vadd.f32 %v850_v60, %v847_v61 }
 0xfae   :  { %v857_v63 = vrot.slane %v3863_v62, 2  ;;  %v961_v24 = vrot.slane %v3863_v62, 6 }
 0xfb0   :  { %858 = vrot.lane.b32.xlu1 %v857_v63, %s3506_s3 }
0x1022   :  { %v859_v0 = vpop.permute.xlu1 %858 }
0x1023   :  { %3139 = vmatmul.mubr.msk.f32.vlgmr.msra.gmra.mxu1 %vm185_vm3, %v859_v0 }
0x1024   :  { %3153 = vmatpush3.msra.mxu1 %v3601_v1  ;;  %3160 = vmatprep.mubr.msk.f32.mxu1 %vm3503_vm0, %v3502_v3 }
0x1025   :  { %3154 = vmatprep.subr.mxu1 %v3502_v3 }
0x1026   :  { %3155 = vmatpush3.msra.mxu1 %v3607_v4 }
0x1027   :  { %3156 = vmatprep.subr.mxu1 %v3502_v3 }
0x1028   :  { %3157 = vmatpush3.msra.mxu1 %v3617_v6 }
0x1029   :  { %3158 = vmatprep.subr.mxu1 %v3502_v3 }
0x102a   :  { %3159 = vmatpush3.msra.mxu1 %v3630_v8 }
0x10e3   :  { %v928_v5 = vpop.f32.mrf.mxu1 }
0x10e4   :  { %v942_v34 = vadd.f32 %v928_v5, %v3725_v28  ;;  %v933_v10 = vrot.slane %v928_v5, 4 }
0x10e5   :  { %v3140_v7 = vpop.f32.mrf.mxu1 }
0x10e6   :  { %v944_v9 = vrot.slane %v942_v34, 4  ;;  %v935_v11 = vadd.f32 %v933_v10, %v3829_v15 }
0x10e8   :  { %945 = vrot.lane.b32.xlu0 %v944_v9, %s3504_s29  ;;  %v2823_v12 = vmul.f32 -1.442695, %v935_v11 }
0x10ea   :  { %3395 = vpow2.f32 %v2823_v12 }
0x10f7   :  { %v3396_v14 = vpop.eup %3395 }
0x10f8   :  { %v939_v16 = vadd.f32 1.0, %v3396_v14 }
0x10fa   :  { %3397 = vrcp.f32 %v939_v16 }
0x1107   :  { %v3398_v17 = vpop.eup %3397 }
0x1108   :  { %v955_v23 = vsub.f32 1.0, %v3398_v17  ;;  %v963_v29 = vmul.f32 %v3398_v17, %v961_v24 }
0x115a   :  { %v946_v18 = vpop.permute.xlu0 %945 }
0x115b   :  { %v948_v19 = vmul.f32 %v3398_v17, %v946_v18 }
0x115d   :  { %950 = vrot.lane.b32.xlu1 %v948_v19, %s3504_s29 }
0x11cf   :  { %v951_v20 = vpop.permute.xlu1 %950 }
0x11d0   :  { %v953_v21 = vadd.f32 %v951_v20, %v3829_v15 }
0x11d2   :  { %3399 = vtanh.f32 %v953_v21 }
0x11df   :  { %v3400_v22 = vpop.eup %3399 }
0x11e0   :  { %957 = vrot.lane.b32.xlu0 %v3400_v22, %s3506_s3 }
0x1252   :  { %v958_v26 = vpop.permute.xlu0 %957 }
0x1253   :  { %v960_v30 = vmul.f32 %v958_v26, %v955_v23 }
0x1255   :  { %v3884_v31 = vadd.f32 %v963_v29, %v960_v30 }
0x1257   :  { %v970_v33 = vrot.slane %v3884_v31, 4  ;;  %v1074_v50 = vrot.slane %v3884_v31, 6 }
0x1259   :  { %971 = vrot.lane.b32.xlu1 %v970_v33, %s3506_s3 }
0x12cb   :  { %v972_v35 = vpop.permute.xlu1 %971 }
0x12cc   :  { %3150 = vmatmul.mubr.msk.f32.vlgmr.msra.gmra.mxu0 %vm185_vm3, %v972_v35 }
0x12cd   :  { %3164 = vmatpush3.msra.mxu0 %v3601_v1  ;;  %3171 = vmatprep.mubr.msk.f32.mxu0 %vm3503_vm0, %v3502_v3 }
0x12ce   :  { %3165 = vmatprep.subr.mxu0 %v3502_v3 }
0x12cf   :  { %3166 = vmatpush3.msra.mxu0 %v3607_v4 }
0x12d0   :  { %3167 = vmatprep.subr.mxu0 %v3502_v3 }
0x12d1   :  { %3168 = vmatpush3.msra.mxu0 %v3617_v6 }
0x12d2   :  { %3169 = vmatprep.subr.mxu0 %v3502_v3 }
0x12d3   :  { %3170 = vmatpush3.msra.mxu0 %v3630_v8 }
0x12d4   :  { %3209 = vmatprep.subr.mxu0 %v3502_v3 }
0x138c   :  { %v1041_v36 = vpop.f32.mrf.mxu0 }
0x138d   :  { %v1055_v1 = vadd.f32 %v1041_v36, %v3725_v28  ;;  %v1046_v40 = vrot.slane %v1041_v36, 2 }
0x138e   :  { %v3151_v37 = vpop.f32.mrf.mxu0 }
0x138f   :  { %v1057_v39 = vrot.slane %v1055_v1, 2  ;;  %v1048_v4 = vadd.f32 %v1046_v40, %v3829_v15  ;;  %v1301_v37 = vld [vmem:[%s4300_s1] sm:$0xff]  ;;  %v1317_v40 = vld [vmem:[%s4305_s6 + $0x70] sm:$0xff] }
0x1391   :  { %1058 = vrot.lane.b32.xlu0 %v1057_v39, %s3504_s29  ;;  %v2825_v42 = vmul.f32 -1.442695, %v1048_v4  ;;  %v1318_v39 = vld [vmem:[%s4305_s6 + $0x78] sm:$0xff]  ;;  %v1316_v4 = vld [vmem:[%s4305_s6 + $0x68] sm:$0xff] }
0x1392   :  { %3174 = vmatprep.subr.mxu1 %v1318_v39 }
0x1393   :  { %3401 = vpow2.f32 %v2825_v42  ;;  %v3947_v42 = vld [vmem:[%s4307_s8 + $0x18] sm:$0xff] }
0x13a0   :  { %v3402_v43 = vpop.eup %3401 }
0x13a1   :  { %v1052_v6 = vadd.f32 1.0, %v3402_v43  ;;  %v3952_v43 = vld [vmem:[%s4307_s8 + $0x10] sm:$0xff] }
0x13a3   :  { %3403 = vrcp.f32 %v1052_v6  ;;  %v1315_v6 = vld [vmem:[%s4305_s6 + $0x60] sm:$0xff] }
0x13b0   :  { %v3404_v44 = vpop.eup %3403 }
0x13b1   :  { %v1068_v49 = vsub.f32 1.0, %v3404_v44  ;;  %v1076_v52 = vmul.f32 %v3404_v44, %v1074_v50  ;;  %v1309_v50 = vld [vmem:[%s4305_s6 + $0x30] sm:$0xff] }
0x1403   :  { %v1059_v45 = vpop.permute.xlu0 %1058 }
0x1404   :  { %v1061_v8 = vmul.f32 %v3404_v44, %v1059_v45  ;;  %v3962_v44 = vld [vmem:[%s4307_s8 + $0x8] sm:$0xff]  ;;  %v1314_v45 = vld [vmem:[%s4305_s6 + $0x58] sm:$0xff] }
0x1406   :  { %1063 = vrot.lane.b32.xlu1 %v1061_v8, %s3504_s29  ;;  %v3972_v8 = vld [vmem:[%s4307_s8] sm:$0xff] }
0x1478   :  { %v1064_v46 = vpop.permute.xlu1 %1063 }
0x1479   :  { %v1066_v47 = vadd.f32 %v1064_v46, %v3829_v15  ;;  %v1313_v46 = vld [vmem:[%s4305_s6 + $0x50] sm:$0xff] }
0x147b   :  { %3405 = vtanh.f32 %v1066_v47  ;;  %v1312_v47 = vld [vmem:[%s4305_s6 + $0x48] sm:$0xff] }
0x1488   :  { %v3406_v48 = vpop.eup %3405 }
0x1489   :  { %1070 = vrot.lane.b32.xlu0 %v3406_v48, %s3506_s3  ;;  %v1311_v48 = vld [vmem:[%s4305_s6 + $0x40] sm:$0xff] }
0x14fb   :  { %v1071_v51 = vpop.permute.xlu0 %1070 }
0x14fc   :  { %v1073_v53 = vmul.f32 %v1071_v51, %v1068_v49  ;;  %v1310_v49 = vld [vmem:[%s4305_s6 + $0x38] sm:$0xff]  ;;  %v1308_v51 = vld [vmem:[%s4305_s6 + $0x28] sm:$0xff] }
0x14fe   :  { %v3906_v54 = vadd.f32 %v1076_v52, %v1073_v53  ;;  %v1307_v52 = vld [vmem:[%s4305_s6 + $0x20] sm:$0xff]  ;;  %v1306_v53 = vld [vmem:[%s4305_s6 + $0x18] sm:$0xff] }
0x1500   :  { %v1083_v55 = vrot.slane %v3906_v54, 6 }
0x1502   :  { %1084 = vrot.lane.b32.xlu1 %v1083_v55, %s3506_s3 }
0x1574   :  { %v1085_v56 = vpop.permute.xlu1 %1084 }
0x1575   :  { %3161 = vmatmul.mubr.msk.f32.vlgmr.msra.gmra.mxu1 %vm185_vm3, %v1085_v56 }
0x1576   :  { %3175 = vmatpush3.msra.mxu1 %v1318_v39 }
0x1577   :  { %3176 = vmatprep.subr.mxu1 %v1317_v40 }
0x1578   :  { %3177 = vmatpush3.msra.mxu1 %v1317_v40 }
0x1579   :  { %3178 = vmatprep.subr.mxu1 %v1316_v4 }
0x157a   :  { %3179 = vmatpush3.msra.mxu1 %v1316_v4 }
0x157b   :  { %3180 = vmatprep.subr.mxu1 %v1315_v6 }
0x157c   :  { %3181 = vmatpush3.msra.mxu1 %v1315_v6 }
0x157d   :  { %3182 = vmatprep.subr.mxu1 %v1314_v45 }
0x157e   :  { %3183 = vmatpush3.msra.mxu1 %v1314_v45 }
0x157f   :  { %3184 = vmatprep.subr.mxu1 %v1313_v46 }
0x1580   :  { %3185 = vmatpush3.msra.mxu1 %v1313_v46 }
0x1581   :  { %3186 = vmatprep.subr.mxu1 %v1312_v47 }
0x1582   :  { %3187 = vmatpush3.msra.mxu1 %v1312_v47 }
0x1583   :  { %3188 = vmatprep.subr.mxu1 %v1311_v48 }
0x1584   :  { %3189 = vmatpush3.msra.mxu1 %v1311_v48 }
0x1585   :  { %3190 = vmatprep.subr.mxu1 %v1310_v49 }
0x1586   :  { %3191 = vmatpush3.msra.mxu1 %v1310_v49 }
0x1587   :  { %3192 = vmatprep.subr.mxu1 %v1309_v50 }
0x1588   :  { %3193 = vmatpush3.msra.mxu1 %v1309_v50 }
0x1589   :  { %3194 = vmatprep.subr.mxu1 %v1308_v51 }
0x158a   :  { %3195 = vmatpush3.msra.mxu1 %v1308_v51 }
0x158b   :  { %3196 = vmatprep.subr.mxu1 %v1307_v52 }
0x158c   :  { %3197 = vmatpush3.msra.mxu1 %v1307_v52 }
0x158d   :  { %3198 = vmatprep.subr.mxu1 %v1306_v53 }
0x158e   :  { %3199 = vmatpush3.msra.mxu1 %v1306_v53 }
0x1635   :  { %v1154_v15 = vpop.f32.mrf.mxu1 }
0x1636   :  { %v1165_v57 = vadd.f32 %v1154_v15, %v3725_v28  ;;  %v1158_v60 = vadd.f32 %v1154_v15, %v182_v59  ;;  %v1305_v15 = vld [vmem:[%s4305_s6 + $0x10] sm:$0xff] }
0x1637   :  { %v3162_v58 = vpop.f32.mrf.mxu1  ;;  %3200 = vmatprep.subr.mxu1 %v1305_v15 }
0x1638   :  { %1167 = vrot.lane.b32.xlu0 %v1165_v57, %s3504_s29  ;;  %v2827_v61 = vmul.f32 -1.442695, %v1158_v60  ;;  %v1304_v60 = vld [vmem:[%s4305_s6 + $0x8] sm:$0xff]  ;;  %3201 = vmatpush3.msra.mxu1 %v1305_v15 }
0x1639   :  { %3202 = vmatprep.subr.mxu1 %v1304_v60 }
0x163a   :  { %3407 = vpow2.f32 %v2827_v61  ;;  %3203 = vmatpush3.msra.mxu1 %v1304_v60 }
0x1647   :  { %v3408_v63 = vpop.eup %3407 }
0x1648   :  { %v1162_v0 = vadd.f32 1.0, %v3408_v63  ;;  %v1303_v63 = vld [vmem:[%s4305_s6] sm:$0xff] }
0x1649   :  { %3204 = vmatprep.subr.mxu1 %v1303_v63 }
0x164a   :  { %3409 = vrcp.f32 %v1162_v0  ;;  %3205 = vmatpush3.msra.mxu1 %v1303_v63 }
0x164b   :  { %3253 = vmatprep.subr.mxu1 %v3502_v3 }
0x1657   :  { %v3410_v5 = vpop.eup %3409 }
0x1658   :  { %v1177_v12 = vsub.f32 1.0, %v3410_v5  ;;  %v1184_v32 = vmul.f32 %v3410_v5, %v1083_v55 }
0x16aa   :  { %v1168_v34 = vpop.permute.xlu0 %1167 }
0x16ab   :  { %v1170_v7 = vmul.f32 %v3410_v5, %v1168_v34  ;;  %v1302_v5 = vld [vmem:[%s4300_s1 + $0x8] sm:$0xff]  ;;  %v2837_v34 = vld [vmem:[%s4308_s9] ss:$0 sm:$0xff] }
0x16ad   :  { %1172 = vrot.lane.b32.xlu1 %v1170_v7, %s3504_s29 }
0x171f   :  { %v1173_v9 = vpop.permute.xlu1 %1172 }
0x1720   :  { %v1175_v10 = vadd.f32 %v1173_v9, %v182_v59 }
0x1722   :  { %3411 = vtanh.f32 %v1175_v10 }
0x172f   :  { %v3412_v11 = vpop.eup %3411 }
0x1730   :  { %1179 = vrot.lane.b32.xlu0 %v3412_v11, %s3506_s3 }
0x17a2   :  { %v1180_v14 = vpop.permute.xlu0 %1179 }
0x17a3   :  { %v1182_v38 = vmul.f32 %v1180_v14, %v1177_v12 }
0x17a5   :  { %v3917_v16 = vadd.f32 %v1184_v32, %v1182_v38  ;;  %v2832_v32 = vld [vmem:[%s4306_s7] ss:$0 sm:$0xff] }
0x17a7   :  { %1187 = vrot.lane.b32.xlu1 %v3917_v16, %s3506_s3  ;;  %v1292_v55 = vrot.slane %v3917_v16, 6 }
0x1819   :  { %v1188_v17 = vpop.permute.xlu1 %1187 }
0x181a   :  { %1190 = vst.msk [vmem:[#allocation2 + $0x10] sm:$0x3] %vm298_vm2, %v1188_v17  ;;  %3172 = vmatmul.mubr.msk.f32.vlgmr.msra.gmra.mxu0 %vm185_vm3, %v1188_v17 }
0x181b   :  { %3217 = vmatprep.mubr.msk.f32.mxu0 %vm3503_vm0, %v3502_v3  ;;  %3210 = vmatpush3.msra.mxu0 %v3947_v42 }
0x181c   :  { %3211 = vmatprep.subr.mxu0 %v3502_v3 }
0x181d   :  { %3212 = vmatpush3.msra.mxu0 %v3952_v43 }
0x181e   :  { %3213 = vmatprep.subr.mxu0 %v3502_v3 }
0x181f   :  { %3214 = vmatpush3.msra.mxu0 %v3962_v44 }
0x1820   :  { %3215 = vmatprep.subr.mxu0 %v3502_v3 }
0x1821   :  { %3216 = vmatpush3.msra.mxu0 %v3972_v8 }
0x1822   :  { %3220 = vmatprep.subr.mxu0 %v3502_v3 }
0x18da   :  { %v1259_v18 = vpop.f32.mrf.mxu0 }
0x18db   :  { %v1273_v19 = vadd.f32 %v1259_v18, %v3725_v28  ;;  %v1264_v22 = vrot.slane %v1259_v18, 6 }
0x18dc   :  { %v3173_v20 = vpop.f32.mrf.mxu0 }
0x18dd   :  { %v1275_v21 = vrot.slane %v1273_v19, 6  ;;  %v1266_v23 = vadd.f32 %v1264_v22, %v182_v59 }
0x18df   :  { %1276 = vrot.lane.b32.xlu0 %v1275_v21, %s3504_s29  ;;  %v2829_v24 = vmul.f32 -1.442695, %v1266_v23 }
0x18e1   :  { %3413 = vpow2.f32 %v2829_v24 }
0x18ee   :  { %v3414_v26 = vpop.eup %3413 }
0x18ef   :  { %v1270_v29 = vadd.f32 1.0, %v3414_v26 }
0x18f1   :  { %3415 = vrcp.f32 %v1270_v29 }
0x18fe   :  { %v3927_v30 = vpop.eup %3415 }
0x18ff   :  { %v1286_v56 = vsub.f32 1.0, %v3927_v30 }
0x1951   :  { %v1277_v33 = vpop.permute.xlu0 %1276 }
0x1952   :  { %v1279_v35 = vmul.f32 %v3927_v30, %v1277_v33 }
0x1954   :  { %1281 = vrot.lane.b32.xlu1 %v1279_v35, %s3504_s29 }
0x19c6   :  { %v1282_v36 = vpop.permute.xlu1 %1281 }
0x19c7   :  { %v1284_v28 = vadd.f32 %v1282_v36, %v182_v59  ;;  %v1294_v59 = vmul.f32 %v3927_v30, %v1292_v55 }
0x19c9   :  { %3417 = vtanh.f32 %v1284_v28 }
0x19d6   :  { %v3418_v1 = vpop.eup %3417 }
0x19d7   :  { %1288 = vrot.lane.b32.xlu0 %v3418_v1, %s3506_s3 }
0x19db   :  { %1326 = vperm.xlu0 %3357, %v1301_v37  }
0x19df   :  { %1505 = vrot.lane.b32.xlu0 %v2837_v34, %s3504_s29 }
0x1a49   :  { %v1289_v57 = vpop.permute.xlu0 %1288 }
0x1a4a   :  { %v1291_v58 = vmul.f32 %v1289_v57, %v1286_v56 }
0x1a4c   :  { %v4011_v61 = vadd.f32 %v1294_v59, %v1291_v58 }
0x1a4e   :  { %v1418_v0 = vrot.slane %v4011_v61, 2 }
0x1a50   :  { %1419 = vrot.lane.b32.xlu1 %v1418_v0, %s3506_s3 }
0x1a54   :  { %1329 = vperm.xlu1 %3358, %v1302_v5  }
0x1a56   :  { %v1327_v7 = vpop.permute.xlu0 %1326 }
0x1a57   :  { %vm1331_vm6 = vcmp.eq.s32.totalorder %v1327_v7, %v3711_v25 }
0x1a58   :  { %3206 = vmatprep.mubr.msk.f32.mxu1 %vm1331_vm6, %v3505_v27 }
0x1ac2   :  { %v1420_v9 = vpop.permute.xlu1 %1419 }
0x1ac3   :  { %3218 = vmatmul.mubr.msk.f32.vlgmr.msra.gmra.mxu0 %vm185_vm3, %v1420_v9 }
0x1ac4   :  { %3221 = vmatpush3.msra.mxu0 %v3947_v42  ;;  %3228 = vmatprep.mubr.msk.f32.mxu0 %vm3503_vm0, %v3502_v3 }
0x1ac5   :  { %3222 = vmatprep.subr.mxu0 %v3502_v3 }
0x1ac6   :  { %3223 = vmatpush3.msra.mxu0 %v3952_v43 }
0x1ac7   :  { %3224 = vmatprep.subr.mxu0 %v3502_v3 }
0x1ac8   :  { %3225 = vmatpush3.msra.mxu0 %v3962_v44 }
0x1ac9   :  { %3226 = vmatprep.subr.mxu0 %v3502_v3 }
0x1aca   :  { %3227 = vmatpush3.msra.mxu0 %v3972_v8 }
0x1acb   :  { %3231 = vmatprep.subr.mxu0 %v3502_v3 }
0x1acf   :  { %v1330_v10 = vpop.permute.xlu1 %1329 }
0x1ad0   :  { %vm1332_vm7 = vcmp.eq.s32.totalorder %v1330_v10, %v3711_v25  ;;  %v4053_v25 = vpop.permute.xlu0 %1505 }
0x1ad1   :  { %3207 = vmatmul.mubr.msk.f32.vlgmr.msra.gmra.mxu1 %vm1332_vm7, %v3505_v27 }
0x1ad2   :  { %3254 = vmatpush3.msra.mxu1 %v3947_v42  ;;  %3261 = vmatprep.mubr.msk.f32.mxu1 %vm3503_vm0, %v3502_v3 }
0x1ad3   :  { %3255 = vmatprep.subr.mxu1 %v3502_v3 }
0x1ad4   :  { %3256 = vmatpush3.msra.mxu1 %v3952_v43 }
0x1ad5   :  { %3257 = vmatprep.subr.mxu1 %v3502_v3 }
0x1ad6   :  { %3258 = vmatpush3.msra.mxu1 %v3962_v44 }
0x1ad7   :  { %3259 = vmatprep.subr.mxu1 %v3502_v3 }
0x1ad8   :  { %3260 = vmatpush3.msra.mxu1 %v3972_v8 }
0x1ad9   :  { %3275 = vmatprep.subr.mxu1 %v3502_v3 }
0x1b83   :  { %v1489_v27 = vpop.f32.mrf.mxu0 }
0x1b84   :  { %v1508_v11 = vadd.f32 %v4053_v25, %v1489_v27 }
0x1b85   :  { %v3219_v12 = vpop.f32.mrf.mxu0 }
0x1b86   :  { %1510 = vrot.lane.b32.xlu1 %v1508_v11, %s3504_s29 }
0x1b91   :  { %v3208_v14 = vpop.f32.mrf.mxu1 }
0x1b92   :  { %v4060_v38 = vadd.f32 %v3208_v14, %v2832_v32 }
0x1b93   :  { %v1409_v16 = vpop.f32.mrf.mxu1 }
0x1b94   :  { %v4062_v17 = vadd.f32 %v2832_v32, %v1409_v16 }
0x1b96   :  { %v1493_v18 = vadd.f32 %v1489_v27, %v4062_v17 }
0x1b98   :  { %v2836_v19 = vmul.f32 -1.442695, %v1493_v18 }
0x1b9a   :  { %3419 = vpow2.f32 %v2836_v19 }
0x1ba7   :  { %v3420_v20 = vpop.eup %3419 }
0x1ba8   :  { %v1497_v21 = vadd.f32 1.0, %v3420_v20 }
0x1baa   :  { %3421 = vrcp.f32 %v1497_v21 }
0x1bb7   :  { %v3422_v22 = vpop.eup %3421 }
0x1bb8   :  { %v1520_v33 = vsub.f32 1.0, %v3422_v22  ;;  %v1527_v36 = vmul.f32 %v3422_v22, %v1418_v0 }
0x1bf8   :  { %v1511_v23 = vpop.permute.xlu1 %1510 }
0x1bf9   :  { %v1513_v24 = vmul.f32 %v3422_v22, %v1511_v23 }
0x1bfb   :  { %1515 = vrot.lane.b32.xlu0 %v1513_v24, %s3504_s29 }
0x1c6d   :  { %v1516_v26 = vpop.permute.xlu0 %1515 }
0x1c6e   :  { %v1518_v29 = vadd.f32 %v1516_v26, %v4062_v17 }
0x1c70   :  { %3423 = vtanh.f32 %v1518_v29 }
0x1c7d   :  { %v3424_v30 = vpop.eup %3423 }
0x1c7e   :  { %1522 = vrot.lane.b32.xlu1 %v3424_v30, %s3506_s3 }
0x1cf0   :  { %v1523_v35 = vpop.permute.xlu1 %1522 }
0x1cf1   :  { %v1525_v28 = vmul.f32 %v1523_v35, %v1520_v33 }
0x1cf3   :  { %v1528_v1 = vadd.f32 %v1527_v36, %v1525_v28 }
0x1cf5   :  { %1530 = vrot.lane.b32.xlu0 %v1528_v1, %s3506_s3  ;;  %v1635_v15 = vrot.slane %v1528_v1, 6 }
0x1d67   :  { %v1531_v37 = vpop.permute.xlu0 %1530 }
0x1d68   :  { %1533 = vst.msk [vmem:[#allocation3] sm:$0x3] %vm298_vm2, %v1531_v37  ;;  %3229 = vmatmul.mubr.msk.f32.vlgmr.msra.gmra.mxu0 %vm185_vm3, %v1531_v37 }
0x1d69   :  { %3232 = vmatpush3.msra.mxu0 %v3947_v42  ;;  %3239 = vmatprep.mubr.msk.f32.mxu0 %vm3503_vm0, %v3502_v3 }
0x1d6a   :  { %3233 = vmatprep.subr.mxu0 %v3502_v3 }
0x1d6b   :  { %3234 = vmatpush3.msra.mxu0 %v3952_v43 }
0x1d6c   :  { %3235 = vmatprep.subr.mxu0 %v3502_v3 }
0x1d6d   :  { %3236 = vmatpush3.msra.mxu0 %v3962_v44 }
0x1d6e   :  { %3237 = vmatprep.subr.mxu0 %v3502_v3 }
0x1d6f   :  { %3238 = vmatpush3.msra.mxu0 %v3972_v8 }
0x1d70   :  { %3242 = vmatprep.subr.mxu0 %v3502_v3 }
0x1e28   :  { %v1602_v39 = vpop.f32.mrf.mxu0 }
0x1e29   :  { %v1616_v40 = vadd.f32 %v1602_v39, %v4053_v25  ;;  %v1607_v45 = vrot.slane %v1602_v39, 6 }
0x1e2a   :  { %v3230_v4 = vpop.f32.mrf.mxu0 }
0x1e2b   :  { %v1618_v6 = vrot.slane %v1616_v40, 6  ;;  %v1609_v46 = vadd.f32 %v1607_v45, %v4062_v17 }
0x1e2d   :  { %1619 = vrot.lane.b32.xlu1 %v1618_v6, %s3504_s29  ;;  %v2839_v47 = vmul.f32 -1.442695, %v1609_v46 }
0x1e2f   :  { %3425 = vpow2.f32 %v2839_v47 }
0x1e3c   :  { %v3426_v48 = vpop.eup %3425 }
0x1e3d   :  { %v1613_v49 = vadd.f32 1.0, %v3426_v48 }
0x1e3f   :  { %3427 = vrcp.f32 %v1613_v49 }
0x1e4c   :  { %v3428_v50 = vpop.eup %3427 }
0x1e4d   :  { %v1629_v57 = vsub.f32 1.0, %v3428_v50  ;;  %v1637_v60 = vmul.f32 %v3428_v50, %v1635_v15 }
0x1e9f   :  { %v1620_v51 = vpop.permute.xlu1 %1619 }
0x1ea0   :  { %v1622_v52 = vmul.f32 %v3428_v50, %v1620_v51 }
0x1ea2   :  { %1624 = vrot.lane.b32.xlu0 %v1622_v52, %s3504_s29 }
0x1f14   :  { %v1625_v53 = vpop.permute.xlu0 %1624 }
0x1f15   :  { %v1627_v55 = vadd.f32 %v1625_v53, %v4062_v17 }
0x1f17   :  { %3429 = vtanh.f32 %v1627_v55 }
0x1f24   :  { %v3430_v56 = vpop.eup %3429 }
0x1f25   :  { %1631 = vrot.lane.b32.xlu1 %v3430_v56, %s3506_s3 }
0x1f97   :  { %v1632_v58 = vpop.permute.xlu1 %1631 }
0x1f98   :  { %v1634_v59 = vmul.f32 %v1632_v58, %v1629_v57 }
0x1f9a   :  { %v4089_v63 = vadd.f32 %v1637_v60, %v1634_v59 }
0x1f9c   :  { %v1644_v0 = vrot.slane %v4089_v63, 2  ;;  %v1748_v24 = vrot.slane %v4089_v63, 6 }
0x1f9e   :  { %1645 = vrot.lane.b32.xlu0 %v1644_v0, %s3506_s3 }
0x2010   :  { %v1646_v5 = vpop.permute.xlu0 %1645 }
0x2011   :  { %3240 = vmatmul.mubr.msk.f32.vlgmr.msra.gmra.mxu0 %vm185_vm3, %v1646_v5 }
0x2012   :  { %3243 = vmatpush3.msra.mxu0 %v3947_v42  ;;  %3250 = vmatprep.mubr.msk.f32.mxu0 %vm3503_vm0, %v3502_v3 }
0x2013   :  { %3244 = vmatprep.subr.mxu0 %v3502_v3 }
0x2014   :  { %3245 = vmatpush3.msra.mxu0 %v3952_v43 }
0x2015   :  { %3246 = vmatprep.subr.mxu0 %v3502_v3 }
0x2016   :  { %3247 = vmatpush3.msra.mxu0 %v3962_v44 }
0x2017   :  { %3248 = vmatprep.subr.mxu0 %v3502_v3 }
0x2018   :  { %3249 = vmatpush3.msra.mxu0 %v3972_v8 }
0x2019   :  { %3264 = vmatprep.subr.mxu0 %v3502_v3 }
0x20d1   :  { %v1715_v34 = vpop.f32.mrf.mxu0 }
0x20d2   :  { %v1729_v7 = vadd.f32 %v1715_v34, %v4053_v25  ;;  %v1720_v27 = vrot.slane %v1715_v34, 4 }
0x20d3   :  { %v3241_v9 = vpop.f32.mrf.mxu0 }
0x20d4   :  { %v1731_v10 = vrot.slane %v1729_v7, 4  ;;  %v1722_v11 = vadd.f32 %v1720_v27, %v4062_v17 }
0x20d6   :  { %1732 = vrot.lane.b32.xlu1 %v1731_v10, %s3504_s29  ;;  %v2841_v12 = vmul.f32 -1.442695, %v1722_v11 }
0x20d8   :  { %3431 = vpow2.f32 %v2841_v12 }
0x20e5   :  { %v3432_v14 = vpop.eup %3431 }
0x20e6   :  { %v1726_v32 = vadd.f32 1.0, %v3432_v14 }
0x20e8   :  { %3433 = vrcp.f32 %v1726_v32 }
0x20f5   :  { %v3434_v16 = vpop.eup %3433 }
0x20f6   :  { %v1742_v23 = vsub.f32 1.0, %v3434_v16  ;;  %v1750_v29 = vmul.f32 %v3434_v16, %v1748_v24 }
0x2148   :  { %v1733_v18 = vpop.permute.xlu1 %1732 }
0x2149   :  { %v1735_v19 = vmul.f32 %v3434_v16, %v1733_v18 }
0x214b   :  { %1737 = vrot.lane.b32.xlu0 %v1735_v19, %s3504_s29 }
0x21bd   :  { %v1738_v20 = vpop.permute.xlu0 %1737 }
0x21be   :  { %v1740_v21 = vadd.f32 %v1738_v20, %v4062_v17 }
0x21c0   :  { %3435 = vtanh.f32 %v1740_v21 }
0x21cd   :  { %v3436_v22 = vpop.eup %3435 }
0x21ce   :  { %1744 = vrot.lane.b32.xlu1 %v3436_v22, %s3506_s3 }
0x2240   :  { %v1745_v26 = vpop.permute.xlu1 %1744 }
0x2241   :  { %v1747_v30 = vmul.f32 %v1745_v26, %v1742_v23 }
0x2243   :  { %v4111_v33 = vadd.f32 %v1750_v29, %v1747_v30 }
0x2245   :  { %v1757_v35 = vrot.slane %v4111_v33, 4  ;;  %v1861_v55 = vrot.slane %v4111_v33, 6 }
0x2247   :  { %1758 = vrot.lane.b32.xlu0 %v1757_v35, %s3506_s3 }
0x22b9   :  { %v1759_v36 = vpop.permute.xlu0 %1758 }
0x22ba   :  { %3251 = vmatmul.mubr.msk.f32.vlgmr.msra.gmra.mxu0 %vm185_vm3, %v1759_v36 }
0x22bb   :  { %3265 = vmatpush3.msra.mxu0 %v3947_v42  ;;  %3272 = vmatprep.mubr.msk.f32.mxu0 %vm3503_vm0, %v3502_v3 }
0x22bc   :  { %3266 = vmatprep.subr.mxu0 %v3502_v3 }
0x22bd   :  { %3267 = vmatpush3.msra.mxu0 %v3952_v43 }
0x22be   :  { %3268 = vmatprep.subr.mxu0 %v3502_v3 }
0x22bf   :  { %3269 = vmatpush3.msra.mxu0 %v3962_v44 }
0x22c0   :  { %3270 = vmatprep.subr.mxu0 %v3502_v3 }
0x22c1   :  { %3271 = vmatpush3.msra.mxu0 %v3972_v8 }
0x22c2   :  { %3286 = vmatprep.subr.mxu0 %v3502_v3 }
0x237a   :  { %v1828_v28 = vpop.f32.mrf.mxu0 }
0x237b   :  { %v1842_v1 = vadd.f32 %v1828_v28, %v4053_v25  ;;  %v1833_v40 = vrot.slane %v1828_v28, 2 }
0x237c   :  { %v3252_v37 = vpop.f32.mrf.mxu0 }
0x237d   :  { %v1844_v39 = vrot.slane %v1842_v1, 2  ;;  %v1835_v4 = vadd.f32 %v1833_v40, %v4062_v17 }
0x237f   :  { %1845 = vrot.lane.b32.xlu1 %v1844_v39, %s3504_s29  ;;  %v2843_v6 = vmul.f32 -1.442695, %v1835_v4 }
0x2381   :  { %3437 = vpow2.f32 %v2843_v6 }
0x238e   :  { %v3438_v45 = vpop.eup %3437 }
0x238f   :  { %v1839_v46 = vadd.f32 1.0, %v3438_v45 }
0x2391   :  { %3439 = vrcp.f32 %v1839_v46 }
0x239e   :  { %v3440_v47 = vpop.eup %3439 }
0x239f   :  { %v1855_v53 = vsub.f32 1.0, %v3440_v47  ;;  %v1863_v15 = vmul.f32 %v3440_v47, %v1861_v55 }
0x23f1   :  { %v1846_v48 = vpop.permute.xlu1 %1845 }
0x23f2   :  { %v1848_v49 = vmul.f32 %v3440_v47, %v1846_v48 }
0x23f4   :  { %1850 = vrot.lane.b32.xlu0 %v1848_v49, %s3504_s29 }
0x2466   :  { %v1851_v50 = vpop.permute.xlu0 %1850 }
0x2467   :  { %v1853_v51 = vadd.f32 %v1851_v50, %v4062_v17 }
0x2469   :  { %3441 = vtanh.f32 %v1853_v51 }
0x2476   :  { %v3442_v52 = vpop.eup %3441 }
0x2477   :  { %1857 = vrot.lane.b32.xlu1 %v3442_v52, %s3506_s3 }
0x24e9   :  { %v1858_v56 = vpop.permute.xlu1 %1857 }
0x24ea   :  { %v1860_v57 = vmul.f32 %v1858_v56, %v1855_v53 }
0x24ec   :  { %v4133_v58 = vadd.f32 %v1863_v15, %v1860_v57 }
0x24ee   :  { %v1870_v59 = vrot.slane %v4133_v58, 6 }
0x24f0   :  { %1871 = vrot.lane.b32.xlu0 %v1870_v59, %s3506_s3 }
0x2562   :  { %v1872_v60 = vpop.permute.xlu0 %1871 }
0x2563   :  { %3262 = vmatmul.mubr.msk.f32.vlgmr.msra.gmra.mxu1 %vm185_vm3, %v1872_v60 }
0x2564   :  { %3276 = vmatpush3.msra.mxu1 %v3947_v42  ;;  %3283 = vmatprep.mubr.msk.f32.mxu1 %vm3503_vm0, %v3502_v3 }
0x2565   :  { %3277 = vmatprep.subr.mxu1 %v3502_v3 }
0x2566   :  { %3278 = vmatpush3.msra.mxu1 %v3952_v43 }
0x2567   :  { %3279 = vmatprep.subr.mxu1 %v3502_v3 }
0x2568   :  { %3280 = vmatpush3.msra.mxu1 %v3962_v44 }
0x2569   :  { %3281 = vmatprep.subr.mxu1 %v3502_v3 }
0x256a   :  { %3282 = vmatpush3.msra.mxu1 %v3972_v8 }
0x2623   :  { %v1941_v17 = vpop.f32.mrf.mxu1 }
0x2624   :  { %v1952_v0 = vadd.f32 %v1941_v17, %v4053_v25  ;;  %v1945_v34 = vadd.f32 %v1941_v17, %v4060_v38 }
0x2625   :  { %v3263_v5 = vpop.f32.mrf.mxu1 }
0x2626   :  { %1954 = vrot.lane.b32.xlu1 %v1952_v0, %s3504_s29  ;;  %v2845_v7 = vmul.f32 -1.442695, %v1945_v34 }
0x2628   :  { %3443 = vpow2.f32 %v2845_v7 }
0x2635   :  { %v3444_v9 = vpop.eup %3443 }
0x2636   :  { %v1949_v10 = vadd.f32 1.0, %v3444_v9 }
0x2638   :  { %3445 = vrcp.f32 %v1949_v10 }
0x2645   :  { %v3446_v27 = vpop.eup %3445 }
0x2646   :  { %v1964_v18 = vsub.f32 1.0, %v3446_v27  ;;  %v1971_v20 = vmul.f32 %v3446_v27, %v1870_v59 }
0x2698   :  { %v1955_v11 = vpop.permute.xlu1 %1954 }
0x2699   :  { %v1957_v12 = vmul.f32 %v3446_v27, %v1955_v11 }
0x269b   :  { %1959 = vrot.lane.b32.xlu0 %v1957_v12, %s3504_s29 }
0x270d   :  { %v1960_v14 = vpop.permute.xlu0 %1959 }
0x270e   :  { %v1962_v32 = vadd.f32 %v1960_v14, %v4060_v38 }
0x2710   :  { %3447 = vtanh.f32 %v1962_v32 }
0x271d   :  { %v3448_v16 = vpop.eup %3447 }
0x271e   :  { %1966 = vrot.lane.b32.xlu1 %v3448_v16, %s3506_s3 }
0x2790   :  { %v1967_v19 = vpop.permute.xlu1 %1966 }
0x2791   :  { %v1969_v21 = vmul.f32 %v1967_v19, %v1964_v18 }
0x2793   :  { %v1972_v22 = vadd.f32 %v1971_v20, %v1969_v21 }
0x2795   :  { %1974 = vrot.lane.b32.xlu0 %v1972_v22, %s3506_s3  ;;  %v2079_v40 = vrot.slane %v1972_v22, 6 }
0x2807   :  { %v1975_v23 = vpop.permute.xlu0 %1974 }
0x2808   :  { %1977 = vst.msk [vmem:[#allocation3 + $0x8] sm:$0x3] %vm298_vm2, %v1975_v23  ;;  %3273 = vmatmul.mubr.msk.f32.vlgmr.msra.gmra.mxu0 %vm185_vm3, %v1975_v23 }
0x2809   :  { %3287 = vmatpush3.msra.mxu0 %v3947_v42  ;;  %3294 = vmatprep.mubr.msk.f32.mxu0 %vm3503_vm0, %v3502_v3 }
0x280a   :  { %3288 = vmatprep.subr.mxu0 %v3502_v3 }
0x280b   :  { %3289 = vmatpush3.msra.mxu0 %v3952_v43 }
0x280c   :  { %3290 = vmatprep.subr.mxu0 %v3502_v3 }
0x280d   :  { %3291 = vmatpush3.msra.mxu0 %v3962_v44 }
0x280e   :  { %3292 = vmatprep.subr.mxu0 %v3502_v3 }
0x280f   :  { %3293 = vmatpush3.msra.mxu0 %v3972_v8 }
0x28c8   :  { %v2046_v24 = vpop.f32.mrf.mxu0 }
0x28c9   :  { %v2060_v26 = vadd.f32 %v2046_v24, %v4053_v25  ;;  %v2051_v30 = vrot.slane %v2046_v24, 6 }
0x28ca   :  { %v3274_v29 = vpop.f32.mrf.mxu0 }
0x28cb   :  { %v2062_v42 = vrot.slane %v2060_v26, 6  ;;  %v2053_v35 = vadd.f32 %v2051_v30, %v4060_v38 }
0x28cd   :  { %2063 = vrot.lane.b32.xlu1 %v2062_v42, %s3504_s29  ;;  %v2847_v36 = vmul.f32 -1.442695, %v2053_v35 }
0x28cf   :  { %3449 = vpow2.f32 %v2847_v36 }
0x28dc   :  { %v3450_v43 = vpop.eup %3449 }
0x28dd   :  { %v2057_v28 = vadd.f32 1.0, %v3450_v43 }
0x28df   :  { %3451 = vrcp.f32 %v2057_v28 }
0x28ec   :  { %v3452_v44 = vpop.eup %3451 }
0x28ed   :  { %v2073_v4 = vsub.f32 1.0, %v3452_v44  ;;  %v2081_v45 = vmul.f32 %v3452_v44, %v2079_v40 }
0x293f   :  { %v2064_v1 = vpop.permute.xlu1 %2063 }
0x2940   :  { %v2066_v3 = vmul.f32 %v3452_v44, %v2064_v1 }
0x2942   :  { %2068 = vrot.lane.b32.xlu0 %v2066_v3, %s3504_s29 }
0x29b4   :  { %v2069_v8 = vpop.permute.xlu0 %2068 }
0x29b5   :  { %v2071_v37 = vadd.f32 %v2069_v8, %v4060_v38 }
0x29b7   :  { %3453 = vtanh.f32 %v2071_v37 }
0x29c4   :  { %v3454_v39 = vpop.eup %3453 }
0x29c5   :  { %2075 = vrot.lane.b32.xlu1 %v3454_v39, %s3506_s3 }
0x2a37   :  { %v2076_v6 = vpop.permute.xlu1 %2075 }
0x2a38   :  { %v2078_v46 = vmul.f32 %v2076_v6, %v2073_v4  ;;  %v2521_v6 = vld [vmem:[%s4310_s11 + $0x18] sm:$0xff] }
0x2a3a   :  { %v2082_v47 = vadd.f32 %v2081_v45, %v2078_v46 }
0x2a3c   :  { %v2088_v48 = vrot.slane %v2082_v47, 2  ;;  %v2192_v10 = vrot.slane %v2082_v47, 6 }
0x2a3e   :  { %2089 = vrot.lane.b32.xlu0 %v2088_v48, %s3506_s3 }
0x2ab0   :  { %v2090_v49 = vpop.permute.xlu0 %2089 }
0x2ab1   :  { %3284 = vmatmul.mubr.msk.f32.vlgmr.msra.gmra.mxu1 %vm185_vm3, %v2090_v49  ;;  %v2520_v49 = vld [vmem:[%s4310_s11 + $0x10] sm:$0xff] }
0x2b71   :  { %v2159_v50 = vpop.f32.mrf.mxu1 }
0x2b72   :  { %v2173_v51 = vadd.f32 %v2159_v50, %v4053_v25  ;;  %v2164_v55 = vrot.slane %v2159_v50, 4  ;;  %v2519_v50 = vld [vmem:[%s4310_s11 + $0x8] sm:$0xff] }
0x2b73   :  { %v3285_v52 = vpop.f32.mrf.mxu1 }
0x2b74   :  { %v2175_v53 = vrot.slane %v2173_v51, 4  ;;  %v2166_v56 = vadd.f32 %v2164_v55, %v4060_v38  ;;  %v2518_v51 = vld [vmem:[%s4310_s11] sm:$0xff]  ;;  %v2320_v52 = vld [vmem:[%s4309_s10 + $0x8] sm:$0xff] }
0x2b75   :  { %v2319_v55 = vld [vmem:[%s4309_s10] sm:$0xff] }
0x2b76   :  { %2176 = vrot.lane.b32.xlu1 %v2175_v53, %s3504_s29  ;;  %v2849_v15 = vmul.f32 -1.442695, %v2166_v56 }
0x2b78   :  { %3455 = vpow2.f32 %v2849_v15 }
0x2b85   :  { %v3456_v57 = vpop.eup %3455 }
0x2b86   :  { %v2170_v59 = vadd.f32 1.0, %v3456_v57 }
0x2b88   :  { %3457 = vrcp.f32 %v2170_v59 }
0x2b95   :  { %v3458_v60 = vpop.eup %3457 }
0x2b96   :  { %v2186_v9 = vsub.f32 1.0, %v3458_v60  ;;  %v2194_v11 = vmul.f32 %v3458_v60, %v2192_v10 }
0x2be8   :  { %v2177_v17 = vpop.permute.xlu1 %2176 }
0x2be9   :  { %v2179_v0 = vmul.f32 %v3458_v60, %v2177_v17 }
0x2beb   :  { %2181 = vrot.lane.b32.xlu0 %v2179_v0, %s3504_s29 }
0x2c5d   :  { %v2182_v5 = vpop.permute.xlu0 %2181 }
0x2c5e   :  { %v2184_v34 = vadd.f32 %v2182_v5, %v4060_v38 }
0x2c60   :  { %3459 = vtanh.f32 %v2184_v34 }
0x2c6d   :  { %v3460_v7 = vpop.eup %3459 }
0x2c6e   :  { %2188 = vrot.lane.b32.xlu1 %v3460_v7, %s3506_s3 }
0x2ce0   :  { %v2189_v27 = vpop.permute.xlu1 %2188 }
0x2ce1   :  { %v2191_v12 = vmul.f32 %v2189_v27, %v2186_v9 }
0x2ce3   :  { %v4179_v14 = vadd.f32 %v2194_v11, %v2191_v12 }
0x2ce5   :  { %v2201_v32 = vrot.slane %v4179_v14, 4 }
0x2ce7   :  { %2202 = vrot.lane.b32.xlu0 %v2201_v32, %s3506_s3 }
0x2d59   :  { %v2203_v16 = vpop.permute.xlu0 %2202 }
0x2d5a   :  { %3295 = vmatmul.mubr.msk.f32.vlgmr.msra.gmra.mxu0 %vm185_vm3, %v2203_v16 }
0x2e1a   :  { %v2272_v18 = vpop.f32.mrf.mxu0 }
0x2e1b   :  { %v2286_v19 = vadd.f32 %v2272_v18, %v4053_v25  ;;  %v2277_v22 = vrot.slane %v2272_v18, 2 }
0x2e1c   :  { %v3296_v20 = vpop.f32.mrf.mxu0 }
0x2e1d   :  { %v2288_v21 = vrot.slane %v2286_v19, 2  ;;  %v2279_v23 = vadd.f32 %v2277_v22, %v4060_v38  ;;  %v2524_v22 = vld [vmem:[%s4311_s12 + $0x10] sm:$0xff] }
0x2e1f   :  { %2289 = vrot.lane.b32.xlu1 %v2288_v21, %s3504_s29  ;;  %v2851_v24 = vmul.f32 -1.442695, %v2279_v23  ;;  %v2523_v23 = vld [vmem:[%s4311_s12 + $0x8] sm:$0xff] }
0x2e21   :  { %3461 = vpow2.f32 %v2851_v24  ;;  %v2522_v24 = vld [vmem:[%s4311_s12] sm:$0xff] }
0x2e2e   :  { %v3462_v26 = vpop.eup %3461 }
0x2e2f   :  { %v2283_v29 = vadd.f32 1.0, %v3462_v26 }
0x2e31   :  { %3463 = vrcp.f32 %v2283_v29 }
0x2e3e   :  { %v3464_v42 = vpop.eup %3463 }
0x2e3f   :  { %v2299_v44 = vsub.f32 1.0, %v3464_v42 }
0x2e91   :  { %v2290_v30 = vpop.permute.xlu1 %2289 }
0x2e92   :  { %v2292_v35 = vmul.f32 %v3464_v42, %v2290_v30  ;;  %v2695_v30 = vld [vmem:[%s4313_s14 + $0x10] sm:$0xff] }
0x2e94   :  { %2294 = vrot.lane.b32.xlu0 %v2292_v35, %s3504_s29  ;;  %v2694_v35 = vld [vmem:[%s4313_s14 + $0x8] sm:$0xff] }
0x2e98   :  { %1297 = vrot.lane.b32.xlu0 %v4011_v61, %s3506_s3 }
0x2e9c   :  { %966 = vrot.lane.b32.xlu0 %v3884_v31, %s3506_s3 }
0x2ea0   :  { %406 = vrot.lane.b32.xlu0 %v3760_v13, %s3506_s3 }
0x2ea4   :  { %634 = vrot.lane.b32.xlu0 %v3807_v2, %s3506_s3 }
0x2ea8   :  { %1753 = vrot.lane.b32.xlu0 %v4111_v33, %s3506_s3 }
0x2eac   :  { %2084 = vrot.lane.b32.xlu0 %v2082_v47, %s3506_s3 }
0x2f06   :  { %v2295_v25 = vpop.permute.xlu0 %2294 }
0x2f07   :  { %v2297_v36 = vadd.f32 %v2295_v25, %v4060_v38  ;;  %v2693_v25 = vld [vmem:[%s4313_s14] sm:$0xff] }
0x2f09   :  { %3465 = vtanh.f32 %v2297_v36 }
0x2f0a   :  { %v1298_v61 = vpop.permute.xlu0 %1297 }
0x2f0b   :  { %1300 = vst.msk [vmem:[#allocation2 + $0x10] sm:$0xc] %vm409_vm8, %v1298_v61 }
0x2f0e   :  { %v967_v31 = vpop.permute.xlu0 %966 }
0x2f0f   :  { %969 = vst.msk [vmem:[#allocation2 + $0x8] sm:$0x30] %vm523_vm9, %v967_v31 }
0x2f12   :  { %v407_v13 = vpop.permute.xlu0 %406  ;;  %v2318_v2 = vld [vmem:[#allocation2 + $0x10] sm:$0xf] }
0x2f13   :  { %410 = vst.msk [vmem:[#allocation2] sm:$0xc] %vm409_vm8, %v407_v13  ;;  %3297 = vmatprep.subr.msk.mxu1 %vm185_vm3, %v2318_v2  ;;  %3306 = vmatprep.subr.msk.mxu0 %vm2440_vm10, %v2318_v2  ;;  %v2864_v13 = vld [vmem:[%s4312_s13] ss:$0 sm:$0xff]  ;;  %s2792_s13 = sshll.u32 %s3507_s20, 4  ;;  %s2793_s13 = int_to_ptr.vmem [resolvable:$true] %s2792_s13 }
0x2f14   :  { %3298 = vmatpush3.xpose.msk.msra.mxu1 %vm185_vm3, %v2318_v2  ;;  %3307 = vmatpush3.msk.msra.mxu0 %vm2440_vm10, %v2318_v2  ;;  %s3479_s2 = scalar_lea.vmem %s2793_s13, 256  ;;  %p3484_p1 = scmp.lt.s32.totalorder %s2793_s13, %s2793_s13 }
0x2f15   :  { %p3480_p0 = scmp.ne.s32.totalorder %s2793_s13, %s3479_s2  ;;  %p3485_p2 = scmp.lt.s32.totalorder %s3479_s2, %s3479_s2 }
0x2f16   :  { %v3466_v38 = vpop.eup %3465  ;;  %v635_v33 = vpop.permute.xlu0 %634 }
0x2f17   :  { %638 = vst.msk [vmem:[#allocation2] sm:$0xc0] %vm637_vm11, %v635_v33  ;;  %2301 = vrot.lane.b32.xlu1 %v3466_v38, %s3506_s3  ;;  %p3486_p3 = por %p3485_p2, %p3484_p1 }
0x2f19   :  { %p3487_p4 = pnand %p3486_p3, %p3480_p0 }
0x2f1a   :  { %v1754_v43 = vpop.permute.xlu0 %1753 }
0x2f1b   :  { %1756 = vst.msk [vmem:[#allocation3] sm:$0x30] %vm523_vm9, %v1754_v43  ;;  %853 = vrot.lane.b32.xlu1 %v3863_v62, %s3506_s3  ;;  %v2305_v62 = vrot.slane %v4179_v14, 6 }
0x2f1d   :  { %v2307_v3 = vmul.f32 %v3464_v42, %v2305_v62  ;;  %v2696_v42 = vld [vmem:[%s4313_s14 + $0x18] sm:$0xff] }
0x2f1e   :  { %v2085_v28 = vpop.permute.xlu0 %2084 }
0x2f1f   :  { %2087 = vst.msk [vmem:[#allocation3 + $0x8] sm:$0xc] %vm409_vm8, %v2085_v28  ;;  %1079 = vrot.lane.b32.xlu1 %v3906_v54, %s3506_s3 }
0x2f23   :  { %520 = vrot.lane.b32.xlu1 %v3782_v41, %s3506_s3 }
0x2f27   :  { %1640 = vrot.lane.b32.xlu1 %v4089_v63, %s3506_s3 }
0x2f2b   :  { %1866 = vrot.lane.b32.xlu1 %v4133_v58, %s3506_s3 }
0x2f2f   :  { %2197 = vrot.lane.b32.xlu1 %v4179_v14, %s3506_s3  ;;  %v2525_v14 = vld [vmem:[%s4311_s12 + $0x18] sm:$0xff] }
0x2f89   :  { %v2302_v1 = vpop.permute.xlu1 %2301 }
0x2f8a   :  { %v2304_v8 = vmul.f32 %v2302_v1, %v2299_v44  ;;  %v2865_v1 = vld [vmem:[%s4314_s15] ss:$0 sm:$0xff] }
0x2f8c   :  { %v2308_v37 = vadd.f32 %v2307_v3, %v2304_v8 }
0x2f8d   :  { %v854_v54 = vpop.permute.xlu1 %853 }
0x2f8e   :  { %856 = vst.msk [vmem:[#allocation2 + $0x8] sm:$0xc] %vm409_vm8, %v854_v54  ;;  %2310 = vrot.lane.b32.xlu0 %v2308_v37, %s3506_s3 }
0x2f91   :  { %v1080_v41 = vpop.permute.xlu1 %1079 }
0x2f92   :  { %1082 = vst.msk [vmem:[#allocation2 + $0x8] sm:$0xc0] %vm637_vm11, %v1080_v41 }
0x2f95   :  { %v521_v63 = vpop.permute.xlu1 %520 }
0x2f96   :  { %524 = vst.msk [vmem:[#allocation2] sm:$0x30] %vm523_vm9, %v521_v63 }
0x2f99   :  { %v1641_v58 = vpop.permute.xlu1 %1640  ;;  %v2317_v39 = vld [vmem:[#allocation2 + $0x8] sm:$0xff] }
0x2f9a   :  { %1643 = vst.msk [vmem:[#allocation3] sm:$0xc] %vm409_vm8, %v1641_v58  ;;  %3299 = vmatprep.subr.msk.mxu1 %vm185_vm3, %v2317_v39  ;;  %3308 = vmatprep.subr.mxu0 %v2317_v39 }
0x2f9b   :  { %3300 = vmatpush3.xpose.msk.msra.mxu1 %vm185_vm3, %v2317_v39  ;;  %3309 = vmatpush3.msra.mxu0 %v2317_v39 }
0x2f9d   :  { %v1867_v40 = vpop.permute.xlu1 %1866  ;;  %v2316_v4 = vld [vmem:[#allocation2] sm:$0xff] }
0x2f9e   :  { %1869 = vst.msk [vmem:[#allocation3] sm:$0xc0] %vm637_vm11, %v1867_v40  ;;  %3301 = vmatprep.subr.msk.mxu1 %vm185_vm3, %v2316_v4  ;;  %3310 = vmatprep.subr.mxu0 %v2316_v4 }
0x2f9f   :  { %3302 = vmatpush3.xpose.msk.msra.mxu1 %vm185_vm3, %v2316_v4  ;;  %3311 = vmatpush3.msra.mxu0 %v2316_v4 }
0x2fa0   :  { %3326 = vmatprep.subr.mxu1 %v2521_v6  ;;  %3315 = vmatprep.subr.mxu0 %v2525_v14 }
0x2fa1   :  { %v2198_v45 = vpop.permute.xlu1 %2197 }
0x2fa2   :  { %2200 = vst.msk [vmem:[#allocation3 + $0x8] sm:$0x30] %vm523_vm9, %v2198_v45 }
0x2fa5   :  { %v2314_v46 = vld [vmem:[#allocation3] sm:$0xff] }
0x2fa6   :  { %3303 = vmatprep.mubr.msk.f32.mxu1 %vm185_vm3, %v2314_v46 }
0x3000   :  { %v2311_v47 = vpop.permute.xlu0 %2310 }
0x3001   :  { %2313 = vst.msk [vmem:[#allocation3 + $0x8] sm:$0xc0] %vm637_vm11, %v2311_v47 }
0x3008   :  { %v2315_v48 = vld [vmem:[#allocation3 + $0x8] sm:$0xff] }
0x3009   :  { %3304 = vmatmul.mubr.msk.f32.vlgmr.msra.gmra.mxu1 %vm185_vm3, %v2315_v48 }
0x300a   :  { %3327 = vmatpush3.msra.mxu1 %v2521_v6  ;;  %3334 = vmatprep.mubr.msk.f32.mxu1 %vm185_vm3, %v2314_v46 }
0x300b   :  { %3328 = vmatprep.subr.mxu1 %v2520_v49 }
0x300c   :  { %3329 = vmatpush3.msra.mxu1 %v2520_v49 }
0x300d   :  { %3330 = vmatprep.subr.mxu1 %v2519_v50 }
0x300e   :  { %3331 = vmatpush3.msra.mxu1 %v2519_v50 }
0x300f   :  { %3332 = vmatprep.subr.mxu1 %v2518_v51 }
0x3010   :  { %3333 = vmatpush3.msra.mxu1 %v2518_v51 }
0x3011   :  { %3335 = vmatmul.mubr.msk.f32.vlgmr.msra.gmra.mxu1 %vm185_vm3, %v2315_v48 }
0x30c9   :  { %v3305_v53 = vpop.f32.mrf.mxu1 }
0x30ca   :  { %v2408_v56 = vadd.f32 %v3305_v53, %v2320_v52 }
0x30cb   :  { %v2402_v15 = vpop.f32.mrf.mxu1 }
0x30cc   :  { %v2403_v57 = vadd.f32 %v2402_v15, %v2319_v55  ;;  %v2415_v59 = vsel %vm2411_vm12, %v2408_v56, -inf }
0x30cd   :  { %2416 = vmax.xlane.f32.xlu0 %v2415_v59 }
0x30ce   :  { %v2412_v60 = vsel %vm2411_vm12, %v2403_v57, -inf }
0x30cf   :  { %2413 = vmax.xlane.f32.xlu1 %v2412_v60 }
0x30d1   :  { %v3336_v36 = vpop.f32.mrf.mxu1 }
0x30d3   :  { %v2673_v2 = vpop.f32.mrf.mxu1 }
0x3156   :  { %v2417_v17 = vpop.xlane.xlu0 %2416 }
0x3157   :  { %v2419_v0 = vsub.f32 %v2408_v56, %v2417_v17 }
0x3158   :  { %v2414_v5 = vpop.xlane.xlu1 %2413 }
0x3159   :  { %v2422_v34 = vmul.f32 1.442695, %v2419_v0  ;;  %v2418_v7 = vsub.f32 %v2403_v57, %v2414_v5 }
0x315b   :  { %3467 = vpow2.f32 %v2422_v34  ;;  %v2420_v9 = vmul.f32 1.442695, %v2418_v7 }
0x315d   :  { %3469 = vpow2.f32 %v2420_v9 }
0x3168   :  { %v3468_v10 = vpop.eup %3467 }
0x3169   :  { %v2427_v27 = vsel %vm2411_vm12, %v3468_v10, 0.0 }
0x316a   :  { %v3470_v11 = vpop.eup %3469  ;;  %2428 = vadd.xlane.f32.xlu1 %v2427_v27 }
0x316b   :  { %v2424_v12 = vsel %vm2411_vm12, %v3470_v11, 0.0 }
0x316c   :  { %2425 = vadd.xlane.f32.xlu0 %v2424_v12 }
0x31f3   :  { %v2429_v32 = vpop.xlane.xlu1 %2428 }
0x31f4   :  { %3471 = vrcp.f32 %v2429_v32 }
0x31f5   :  { %v2426_v16 = vpop.xlane.xlu0 %2425 }
0x31f6   :  { %3473 = vrcp.f32 %v2426_v16 }
0x3201   :  { %v3472_v18 = vpop.eup %3471 }
0x3202   :  { %v2433_v21 = vmul.f32 %v3472_v18, %v3468_v10 }
0x3203   :  { %v3474_v19 = vpop.eup %3473 }
0x3204   :  { %v2431_v20 = vmul.f32 %v3474_v19, %v3470_v11 }
0x3206   :  { %3312 = vmatprep.mubr.msk.f32.mxu0 %vm2411_vm12, %v2431_v20 }
0x3207   :  { %3313 = vmatmul.mubr.msk.f32.vlgmr.msra.gmra.mxu0 %vm2411_vm12, %v2433_v21 }
0x3208   :  { %3316 = vmatpush3.msra.mxu0 %v2525_v14 }
0x3209   :  { %3317 = vmatprep.subr.mxu0 %v2524_v22 }
0x320a   :  { %3318 = vmatpush3.msra.mxu0 %v2524_v22 }
0x320b   :  { %3319 = vmatprep.subr.mxu0 %v2523_v23 }
0x320c   :  { %3320 = vmatpush3.msra.mxu0 %v2523_v23 }
0x320d   :  { %3321 = vmatprep.subr.mxu0 %v2522_v24 }
0x320e   :  { %3322 = vmatpush3.msra.mxu0 %v2522_v24 }
0x320f   :  { %3337 = vmatprep.subr.mxu0 %v2696_v42 }
0x32c7   :  { %v3314_v26 = vpop.f32.mrf.mxu0 }
0x32c9   :  { %v2509_v29 = vpop.f32.mrf.mxu0 }
0x32ca   :  { %3323 = vmatprep.mubr.msk.f32.mxu0 %vm185_vm3, %v2509_v29 }
0x32cb   :  { %3324 = vmatmul.mubr.msk.f32.vlgmr.msra.gmra.mxu0 %vm185_vm3, %v3314_v26 }
0x32cc   :  { %3338 = vmatpush3.msra.mxu0 %v2696_v42 }
0x32cd   :  { %3339 = vmatprep.subr.mxu0 %v2695_v30 }
0x32ce   :  { %3340 = vmatpush3.msra.mxu0 %v2695_v30 }
0x32cf   :  { %3341 = vmatprep.subr.mxu0 %v2694_v35 }
0x32d0   :  { %3342 = vmatpush3.msra.mxu0 %v2694_v35 }
0x32d1   :  { %3343 = vmatprep.subr.mxu0 %v2693_v25 }
0x32d2   :  { %3344 = vmatpush3.msra.mxu0 %v2693_v25 }
0x338b   :  { %v3325_v61 = vpop.f32.mrf.mxu0 }
0x338c   :  { %v2679_v31 = vadd.f32 %v3336_v36, %v3325_v61 }
0x338d   :  { %v2598_v38 = vpop.f32.mrf.mxu0 }
0x338e   :  { %v2674_v33 = vadd.f32 %v2673_v2, %v2598_v38  ;;  %v2690_v43 = vadd.f32 %v2864_v13, %v2679_v31 }
0x3390   :  { %v2689_v28 = vadd.f32 %v2864_v13, %v2674_v33 }
0x3392   :  { %3475 = vtanh.f32 %v2689_v28 }
0x3393   :  { %3477 = vtanh.f32 %v2690_v43 }
0x339f   :  { %v3476_v44 = vpop.eup %3475 }
0x33a0   :  { %v3478_v62 = vpop.eup %3477  ;;  %3345 = vmatprep.mubr.msk.f32.mxu0 %vm185_vm3, %v3476_v44 }
0x33a1   :  { %3346 = vmatmul.mubr.msk.f32.vlgmr.msra.gmra.mxu0 %vm185_vm3, %v3478_v62 }
0x3461   :  { %v3347_v3 = vpop.f32.mrf.mxu0 }
0x3462   :  { %v2782_v8 = vadd.f32 %v3347_v3, %v2865_v1 }
0x3463   :  { %v2776_v37 = vpop.f32.mrf.mxu0 }
0x3464   :  { %2786 = vst [vmem:[#allocation4 + $0x8] sm:$0xff] %v2782_v8  ;;  %v2777_v54 = vadd.f32 %v2865_v1, %v2776_v37 }
0x3466   :  { %2785 = vst [vmem:[#allocation4] sm:$0xff] %v2777_v54 }
0x3467   :  { %3490 = shalt.err (!%p3487_p4)
}
0x3468   :  { %s3508_s21 = smov 128   ;;  %s3509_s22 = smov 8  }
0x3469   :  { %2798 = dma.vmem_to_hbm [thread:$0]  %s2793_s13, 256, %s4315_s16, [#allocation5], %s3508_s21, %s3508_s21, %s3509_s22  }
0x346a   :  { %3499 = dma.done.wait [#allocation5], 256  }
0x346b   :  { %3500 = vsyncadd [#allocation5], 4294967040 }
0x346c   :  { %2802 = vsyncpa [#allocation5], 1 }

</bundles_post_ra>
